<compile_context>
chip_gen: v6e
topology: v6e:2x2x1
jax: 0.10.0
libtpu: 0.0.40
codegen_flags: <defaults>
</compile_context>

<pallas_src>
import jax
import jax.numpy as jnp
from jax import lax
from jax.experimental import pallas as pl
from jax.experimental.pallas import tpu as pltpu


_SQRT_HALF = 0.7071067811865476


def _gelu_exact(v):
    """PyTorch nn.GELU() default (exact erf) via A&S 7.1.26 (|err| < 1.5e-7)."""
    a = jnp.abs(v) * _SQRT_HALF
    t = pl.reciprocal(1.0 + 0.3275911 * a, approx=True)   # EUP, not VALU
    poly = t * (0.254829592 + t * (-0.284496736 + t * (1.421413741
               + t * (-1.453152027 + t * 1.061405429))))
    e = 1.0 - poly * jnp.exp(-a * a)
    erf = jnp.where(v < 0.0, -e, e)
    return 0.5 * v * (1.0 + erf)


# -----------------------------------------------------------------------------
# Fused DBlock kernel (channel-major, lane-dense layout)
# -----------------------------------------------------------------------------
def _make_dblock_kernel(H, W, C, R, off):
    M = H * W
    K9 = 9 * C

    def kernel(x_ref, w_ref, o_ref, pad_ref):
        # Hoisted constants (reused by every segment / RDBlock).
        wpos = lax.broadcasted_iota(jnp.int32, (C, M), 1) % W
        mask_l = wpos > 0          # kw offset -1 taps are invalid at w == 0
        mask_r = wpos < (W - 1)    # kw offset +1 taps are invalid at w == W-1
        ones_blk = jnp.ones((C, M), jnp.float32)   # bias rows for the fused dots

        # Zero the flat halo buffer once; only [off, off+M) is rewritten per
        # segment, so the zero borders survive all segments / RDBlocks.
        pad_ref[...] = jnp.zeros_like(pad_ref)

        def conv_patches(act):
            """act (C, M) f32 -> nine full-width (C, M) tap slabs (f32)."""
            pad_ref[:, off:off + M] = act          # lane-tile-aligned store
            slabs = []
            for kh in range(3):
                for kw in range(3):
                    start = off + (kh - 1) * W + (kw - 1)
                    s = pad_ref[:, start:start + M]
                    if kw == 0:
                        s = jnp.where(mask_l, s, 0.0)
                    elif kw == 2:
                        s = jnp.where(mask_r, s, 0.0)
                    slabs.append(s)
            return slabs

        def to_bf16(v):
            return v.astype(jnp.bfloat16)

        cur = x_ref[0]                             # (C, M) f32, lane-dense

        for r in range(R):                         # R is small -> unrolled
            w0 = w_ref[r, 0:3 * C, :]              # (3C, 10C) conv1/2/3 <- seg0 (+bias col)
            w1 = w_ref[r, 3 * C:5 * C, 0:K9]       # (2C, 9C)  conv2/3   <- seg1
            w2 = w_ref[r, 5 * C:6 * C, 0:K9]       # (C,  9C)  conv3     <- seg2
            wl = w_ref[r, 6 * C:7 * C, 0:5 * C]    # (C,  5C)  LFF (+bias col)

            # segment 0: current features feed all three convs -> one fused dot
            col0 = to_bf16(jnp.concatenate(conv_patches(cur) + [ones_blk], axis=0))
            y0 = jnp.dot(w0, col0, preferred_element_type=jnp.float32)   # (3C, M)
            out0 = _gelu_exact(y0[0:C])

            # segment 1: out0 feeds conv2 and conv3 -> one fused dot
            col1 = to_bf16(jnp.concatenate(conv_patches(out0), axis=0))
            y1 = jnp.dot(w1, col1, preferred_element_type=jnp.float32)   # (2C, M)
            out1 = _gelu_exact(y0[C:2 * C] + y1[0:C])

            # segment 2: out1 feeds conv3
            col2 = to_bf16(jnp.concatenate(conv_patches(out1), axis=0))
            y2 = jnp.dot(w2, col2, preferred_element_type=jnp.float32)   # (C, M)
            out2 = _gelu_exact(y0[2 * C:3 * C] + y1[C:2 * C] + y2)

            # 1x1 LFF over cat(cur, out0, out1, out2) + residual
            cat = to_bf16(jnp.concatenate([cur, out0, out1, out2, ones_blk], axis=0))
            cur = jnp.dot(wl, cat, preferred_element_type=jnp.float32) + cur

        o_ref[0] = cur                             # full-lane-width unmasked store

    return kernel


def dblock_forward(x, wpk):
    """Fused DBlock forward.  x: (N, C, H, W) float32 (NCHW), wpk: packed bf16 weights."""
    N, C, H, W = x.shape
    M = H * W
    R = wpk.shape[0]
    assert wpk.shape == (R, 7 * C, 10 * C)
    x_flat = x.reshape(N, C, M)                    # free metadata reshape (NCHW contiguous)
    # Flat zero-padded halo buffer: [off leading zeros | image | W+1 trailing zeros];
    # off is lane-tile aligned so the per-segment interior store is unmasked.
    off = ((W + 1 + 127) // 128) * 128
    padw = off + M + W + 1
    kernel = _make_dblock_kernel(H, W, C, R, off)
    out = pl.pallas_call(
        kernel,
        out_shape=jax.ShapeDtypeStruct((N, C, M), jnp.float32),
        grid=(N,),
        in_specs=[
            pl.BlockSpec((1, C, M), lambda n: (n, 0, 0)),              # image n
            pl.BlockSpec((R, 7 * C, 10 * C), lambda n: (0, 0, 0)),     # all weights (tiny)
        ],
        out_specs=pl.BlockSpec((1, C, M), lambda n: (n, 0, 0)),
        scratch_shapes=[pltpu.VMEM((C, padw), jnp.float32)],           # flat zero-halo buf
        compiler_params=pltpu.CompilerParams(
            dimension_semantics=("parallel",),
            vmem_limit_bytes=32 * 1024 * 1024),
    )(x_flat, wpk)
    return out.reshape(N, C, H, W)


# -----------------------------------------------------------------------------
# Parameters: PyTorch-like init, then packed into one matmul-ready bf16 tensor
# -----------------------------------------------------------------------------
def init_dblock_params(key, channel, num_res):
    C = channel
    blocks = []
    for _ in range(num_res):
        convs = []
        for i in range(3):
            cin = C * (i + 1)
            key, wk, bk = jax.random.split(key, 3)
            bound = 1.0 / (cin * 9) ** 0.5
            w = jax.random.uniform(wk, (3, 3, cin, C), jnp.float32, -bound, bound)
            b = jax.random.uniform(bk, (C,), jnp.float32, -bound, bound)
            convs.append((w, b))
        key, wk, bk = jax.random.split(key, 3)
        bound = 1.0 / (4 * C) ** 0.5
        lw = jax.random.uniform(wk, (1, 1, 4 * C, C), jnp.float32, -bound, bound)
        lb = jax.random.uniform(bk, (C,), jnp.float32, -bound, bound)
        blocks.append({"convs": convs, "lff_w": lw, "lff_b": lb})
    return blocks


def pack_dblock_params(blocks, C):
    """Pack a DBlock's weights into one (R, 7C, 10C) bf16 tensor of LHS matrices.

    Per RDBlock page (rows = output channels, cols = contraction):
      rows 0:3C  cols 0:9C : conv1/conv2/conv3 weights for input segment 0
                 col  9C   : conv biases [b1; b2; b3] (paired with a ones block)
      rows 3C:5C cols 0:9C : conv2/conv3 weights for input segment 1
      rows 5C:6C cols 0:9C : conv3 weights for input segment 2
      rows 6C:7C cols 0:4C : 1x1 LFF weights,  col 4C : LFF bias
    Contraction order matches the in-kernel patch matrix: (kh*3 + kw)*C + c.
    """
    K9 = 9 * C
    pages = []
    for blk in blocks:
        (w0, b0), (w1, b1), (w2, b2) = blk["convs"]

        def seg_t(w, g):  # (3,3,Cin,C) -> (C_out, 9C) LHS for input segment g
            return w[:, :, g * C:(g + 1) * C, :].reshape(K9, C).T

        page = jnp.zeros((7 * C, 10 * C), jnp.float32)
        page = page.at[0:3 * C, 0:K9].set(
            jnp.concatenate([seg_t(w0, 0), seg_t(w1, 0), seg_t(w2, 0)], axis=0))
        page = page.at[0:3 * C, K9].set(jnp.concatenate([b0, b1, b2]))
        page = page.at[3 * C:5 * C, 0:K9].set(
            jnp.concatenate([seg_t(w1, 1), seg_t(w2, 1)], axis=0))
        page = page.at[5 * C:6 * C, 0:K9].set(seg_t(w2, 2))
        page = page.at[6 * C:7 * C, 0:4 * C].set(blk["lff_w"].reshape(4 * C, C).T)
        page = page.at[6 * C:7 * C, 4 * C].set(blk["lff_b"])
        pages.append(page)
    return jnp.stack(pages, axis=0).astype(jnp.bfloat16)


# -----------------------------------------------------------------------------
# Pure-JAX reference (correctness validation only)
# -----------------------------------------------------------------------------
def _conv_ref(x, w, bvec):
    out = lax.conv_general_dilated(
        x, w, window_strides=(1, 1), padding="SAME",
        dimension_numbers=("NHWC", "HWIO", "NHWC"),
        precision=lax.Precision.HIGHEST)
    return out + bvec[None, None, None, :]


def dblock_reference(x_nhwc, blocks):
    cur = x_nhwc
    for blk in blocks:
        z = cur
        for (w, bvec) in blk["convs"]:
            out = jax.nn.gelu(_conv_ref(z, w, bvec), approximate=False)
            z = jnp.concatenate([z, out], axis=-1)
        cur = _conv_ref(z, blk["lff_w"], blk["lff_b"]) + cur
    return cur


# -----------------------------------------------------------------------------
if __name__ == "__main__":
    N, C, H, W = 2, 8, 16, 16   # DBlock(channel=8); H*W = 256 lanes (lane-dense)
    NUM_RES = 2                 # ECFNet (level=2, in_nc=1) uses num_res = 2

    root = jax.random.PRNGKey(0)
    pkey, xkey = jax.random.split(root)
    blocks = init_dblock_params(pkey, C, NUM_RES)
    wpk = pack_dblock_params(blocks, C)

    x = jax.random.normal(xkey, (N, C, H, W), jnp.float32)   # NCHW, like PyTorch

    fwd = jax.jit(dblock_forward)
    out = fwd(x, wpk)
    jax.block_until_ready(out)

    ref = jnp.transpose(
        dblock_reference(jnp.transpose(x, (0, 2, 3, 1)), blocks), (0, 3, 1, 2))
    err = float(jnp.max(jnp.abs(out - ref)))

    assert out.shape == (N, C, H, W)
    assert bool(jnp.all(jnp.isfinite(out)))
    # bf16 MXU operands (f32 accumulation) + approx erf/reciprocal -> small drift.
    assert err < 3e-2, f"kernel/reference mismatch: max abs err = {err}"
    print("KERNEL_OK")
</pallas_src>

<mosaic_0001>
module attributes {stable_mosaic.version = 11 : i64} {
  func.func @kernel(%arg0: i32, %arg1: memref<1x8x256xf32, #tpu.memory_space<vmem>>, %arg2: memref<2x56x80xbf16, #tpu.memory_space<vmem>>, %arg3: memref<1x8x256xf32, #tpu.memory_space<vmem>>, %arg4: memref<8x401xf32, #tpu.memory_space<vmem>>) attributes {dimension_semantics = [#tpu.dimension_semantics<parallel>], iteration_bounds = array<i64: 2>, scalar_prefetch = 0 : i64, scratch_operands = 1 : i64, tpu.core_type = #tpu.core_type<tc>, window_params = [{transform_indices = @transform_0, window_bounds = array<i64: 1, 8, 256>}, {pipeline_mode = #tpu.pipeline_mode<synchronous>, transform_indices = @transform_1, window_bounds = array<i64: 2, 56, 80>}, {transform_indices = @transform_2, window_bounds = array<i64: 1, 8, 256>}]} {
    %0 = tpu.iota {dimensions = array<i32: 1>} : vector<8x256xi32>
    %c16_i32 = arith.constant 16 : i32
    %c0_i32 = arith.constant 0 : i32
    %1 = arith.cmpi eq, %c16_i32, %c0_i32 : i32
    %c1_i32 = arith.constant 1 : i32
    %2 = arith.select %1, %c1_i32, %c16_i32 : i32
    %3 = vector.broadcast %2 : i32 to vector<8x256xi32>
    %4 = arith.remsi %0, %3 : vector<8x256xi32>
    %c0_i32_0 = arith.constant 0 : i32
    %5 = vector.broadcast %c0_i32_0 : i32 to vector<8x256xi32>
    %6 = arith.cmpi ne, %4, %5 : vector<8x256xi32>
    %c0_i32_1 = arith.constant 0 : i32
    %7 = vector.broadcast %c0_i32_1 : i32 to vector<8x256xi32>
    %8 = arith.cmpi slt, %4, %7 : vector<8x256xi32>
    %c0_i32_2 = arith.constant 0 : i32
    %9 = arith.cmpi slt, %2, %c0_i32_2 : i32
    %10 = vector.broadcast %9 : i1 to vector<8x256xi1>
    %11 = vector.broadcast %10 : vector<8x256xi1> to vector<8x256xi1>
    %12 = arith.xori %8, %11 : vector<8x256xi1>
    %13 = arith.andi %12, %6 : vector<8x256xi1>
    %14 = vector.broadcast %2 : i32 to vector<8x256xi32>
    %15 = arith.addi %4, %14 : vector<8x256xi32>
    %16 = arith.select %13, %15, %4 : vector<8x256xi1>, vector<8x256xi32>
    %c0_i32_3 = arith.constant 0 : i32
    %17 = vector.broadcast %c0_i32_3 : i32 to vector<8x256xi32>
    %18 = arith.cmpi sgt, %16, %17 : vector<8x256xi32>
    %c15_i32 = arith.constant 15 : i32
    %19 = vector.broadcast %c15_i32 : i32 to vector<8x256xi32>
    %20 = arith.cmpi slt, %16, %19 : vector<8x256xi32>
    %cst = arith.constant 1.000000e+00 : f32
    %21 = vector.broadcast %cst : f32 to vector<8x256xf32>
    %cst_4 = arith.constant 0.000000e+00 : f32
    %22 = vector.broadcast %cst_4 : f32 to vector<8x401xf32>
    %c0 = arith.constant 0 : index
    %c0_5 = arith.constant 0 : index
    %23 = vector.load %arg4[%c0, %c0_5] : memref<8x401xf32, #tpu.memory_space<vmem>>, vector<8x401xf32>
    tpu.vector_store %arg4[%c0, %c0_5], %22 {strides = array<i32>} : memref<8x401xf32, #tpu.memory_space<vmem>>, vector<8x401xf32>,
    %c0_6 = arith.constant 0 : index
    %c0_7 = arith.constant 0 : index
    %c0_8 = arith.constant 0 : index
    %24 = vector.load %arg1[%c0_6, %c0_7, %c0_8] : memref<1x8x256xf32, #tpu.memory_space<vmem>>, vector<1x8x256xf32>
    %25 = vector.shape_cast %24 : vector<1x8x256xf32> to vector<8x256xf32>
    %c0_9 = arith.constant 0 : index
    %c0_10 = arith.constant 0 : index
    %c0_11 = arith.constant 0 : index
    %26 = vector.load %arg2[%c0_9, %c0_10, %c0_11] : memref<2x56x80xbf16, #tpu.memory_space<vmem>>, vector<1x24x80xbf16>
    %27 = vector.shape_cast %26 : vector<1x24x80xbf16> to vector<24x80xbf16>
    %c0_12 = arith.constant 0 : index
    %c24 = arith.constant 24 : index
    %c0_13 = arith.constant 0 : index
    %28 = vector.load %arg2[%c0_12, %c24, %c0_13] : memref<2x56x80xbf16, #tpu.memory_space<vmem>>, vector<1x16x72xbf16>
    %29 = vector.shape_cast %28 : vector<1x16x72xbf16> to vector<16x72xbf16>
    %c0_14 = arith.constant 0 : index
    %c40 = arith.constant 40 : index
    %c0_15 = arith.constant 0 : index
    %30 = vector.load %arg2[%c0_14, %c40, %c0_15] : memref<2x56x80xbf16, #tpu.memory_space<vmem>>, vector<1x8x72xbf16>
    %31 = vector.shape_cast %30 : vector<1x8x72xbf16> to vector<8x72xbf16>
    %c0_16 = arith.constant 0 : index
    %c48 = arith.constant 48 : index
    %c0_17 = arith.constant 0 : index
    %32 = vector.load %arg2[%c0_16, %c48, %c0_17] : memref<2x56x80xbf16, #tpu.memory_space<vmem>>, vector<1x8x40xbf16>
    %33 = vector.shape_cast %32 : vector<1x8x40xbf16> to vector<8x40xbf16>
    %c0_18 = arith.constant 0 : index
    %c128 = arith.constant 128 : index
    %34 = vector.load %arg4[%c0_18, %c128] : memref<8x401xf32, #tpu.memory_space<vmem>>, vector<8x256xf32>
    tpu.vector_store %arg4[%c0_18, %c128], %25 {strides = array<i32>} : memref<8x401xf32, #tpu.memory_space<vmem>>, vector<8x256xf32>,
    %c0_19 = arith.constant 0 : index
    %c111 = arith.constant 111 : index
    %35 = vector.load %arg4[%c0_19, %c111] : memref<8x401xf32, #tpu.memory_space<vmem>>, vector<8x256xf32>
    %cst_20 = arith.constant 0.000000e+00 : f32
    %36 = vector.broadcast %cst_20 : f32 to vector<8x256xf32>
    %37 = arith.select %18, %35, %36 : vector<8x256xi1>, vector<8x256xf32>
    %c0_21 = arith.constant 0 : index
    %c112 = arith.constant 112 : index
    %38 = vector.load %arg4[%c0_21, %c112] : memref<8x401xf32, #tpu.memory_space<vmem>>, vector<8x256xf32>
    %c0_22 = arith.constant 0 : index
    %c113 = arith.constant 113 : index
    %39 = vector.load %arg4[%c0_22, %c113] : memref<8x401xf32, #tpu.memory_space<vmem>>, vector<8x256xf32>
    %cst_23 = arith.constant 0.000000e+00 : f32
    %40 = vector.broadcast %cst_23 : f32 to vector<8x256xf32>
    %41 = arith.select %20, %39, %40 : vector<8x256xi1>, vector<8x256xf32>
    %c0_24 = arith.constant 0 : index
    %c127 = arith.constant 127 : index
    %42 = vector.load %arg4[%c0_24, %c127] : memref<8x401xf32, #tpu.memory_space<vmem>>, vector<8x256xf32>
    %cst_25 = arith.constant 0.000000e+00 : f32
    %43 = vector.broadcast %cst_25 : f32 to vector<8x256xf32>
    %44 = arith.select %18, %42, %43 : vector<8x256xi1>, vector<8x256xf32>
    %c0_26 = arith.constant 0 : index
    %c128_27 = arith.constant 128 : index
    %45 = vector.load %arg4[%c0_26, %c128_27] : memref<8x401xf32, #tpu.memory_space<vmem>>, vector<8x256xf32>
    %c0_28 = arith.constant 0 : index
    %c129 = arith.constant 129 : index
    %46 = vector.load %arg4[%c0_28, %c129] : memref<8x401xf32, #tpu.memory_space<vmem>>, vector<8x256xf32>
    %cst_29 = arith.constant 0.000000e+00 : f32
    %47 = vector.broadcast %cst_29 : f32 to vector<8x256xf32>
    %48 = arith.select %20, %46, %47 : vector<8x256xi1>, vector<8x256xf32>
    %c0_30 = arith.constant 0 : index
    %c143 = arith.constant 143 : index
    %49 = vector.load %arg4[%c0_30, %c143] : memref<8x401xf32, #tpu.memory_space<vmem>>, vector<8x256xf32>
    %cst_31 = arith.constant 0.000000e+00 : f32
    %50 = vector.broadcast %cst_31 : f32 to vector<8x256xf32>
    %51 = arith.select %18, %49, %50 : vector<8x256xi1>, vector<8x256xf32>
    %c0_32 = arith.constant 0 : index
    %c144 = arith.constant 144 : index
    %52 = vector.load %arg4[%c0_32, %c144] : memref<8x401xf32, #tpu.memory_space<vmem>>, vector<8x256xf32>
    %c0_33 = arith.constant 0 : index
    %c145 = arith.constant 145 : index
    %53 = vector.load %arg4[%c0_33, %c145] : memref<8x401xf32, #tpu.memory_space<vmem>>, vector<8x256xf32>
    %cst_34 = arith.constant 0.000000e+00 : f32
    %54 = vector.broadcast %cst_34 : f32 to vector<8x256xf32>
    %55 = arith.select %20, %53, %54 : vector<8x256xi1>, vector<8x256xf32>
    %56 = tpu.concatenate %37, %38, %41, %44, %45, %48, %51, %52, %55, %21 in 0 : vector<8x256xf32>, vector<8x256xf32>, vector<8x256xf32>, vector<8x256xf32>, vector<8x256xf32>, vector<8x256xf32>, vector<8x256xf32>, vector<8x256xf32>, vector<8x256xf32>, vector<8x256xf32> -> vector<80x256xf32>
    %57 = arith.truncf %56 : vector<80x256xf32> to vector<80x256xbf16>
    %cst_35 = arith.constant dense<0.000000e+00> : vector<24x256xf32>
    %58 = tpu.matmul %27, %57, %cst_35 {dimension_numbers = #tpu.dot_dimension_numbers<[1], [0], [0], [1], [0, 0, 1, 1], [], []>} : vector<24x80xbf16>, vector<80x256xbf16>, vector<24x256xf32> -> vector<24x256xf32>
    %59 = vector.extract_strided_slice %58 {offsets = [0, 0], sizes = [8, 256], strides = [1, 1]} : vector<24x256xf32> to vector<8x256xf32>
    %60 = math.absf %59 : vector<8x256xf32>
    %cst_36 = arith.constant 0.707106769 : f32
    %61 = vector.broadcast %cst_36 : f32 to vector<8x256xf32>
    %62 = arith.mulf %60, %61 : vector<8x256xf32>
    %cst_37 = arith.constant 0.327591091 : f32
    %63 = vector.broadcast %cst_37 : f32 to vector<8x256xf32>
    %64 = arith.mulf %63, %62 : vector<8x256xf32>
    %cst_38 = arith.constant 1.000000e+00 : f32
    %65 = vector.broadcast %cst_38 : f32 to vector<8x256xf32>
    %66 = arith.addf %65, %64 : vector<8x256xf32>
    %67 = tpu.reciprocal %66 {approx = true} : vector<8x256xf32> -> vector<8x256xf32>
    %cst_39 = arith.constant 1.06140542 : f32
    %68 = vector.broadcast %cst_39 : f32 to vector<8x256xf32>
    %69 = arith.mulf %67, %68 : vector<8x256xf32>
    %cst_40 = arith.constant -1.45315206 : f32
    %70 = vector.broadcast %cst_40 : f32 to vector<8x256xf32>
    %71 = arith.addf %70, %69 : vector<8x256xf32>
    %72 = arith.mulf %67, %71 : vector<8x256xf32>
    %cst_41 = arith.constant 1.42141378 : f32
    %73 = vector.broadcast %cst_41 : f32 to vector<8x256xf32>
    %74 = arith.addf %73, %72 : vector<8x256xf32>
    %75 = arith.mulf %67, %74 : vector<8x256xf32>
    %cst_42 = arith.constant -0.284496725 : f32
    %76 = vector.broadcast %cst_42 : f32 to vector<8x256xf32>
    %77 = arith.addf %76, %75 : vector<8x256xf32>
    %78 = arith.mulf %67, %77 : vector<8x256xf32>
    %cst_43 = arith.constant 0.254829586 : f32
    %79 = vector.broadcast %cst_43 : f32 to vector<8x256xf32>
    %80 = arith.addf %79, %78 : vector<8x256xf32>
    %81 = arith.mulf %67, %80 : vector<8x256xf32>
    %cst_44 = arith.constant 0.000000e+00 : f32
    %82 = vector.broadcast %cst_44 : f32 to vector<8x256xf32>
    %83 = arith.subf %82, %62 : vector<8x256xf32>
    %84 = arith.mulf %83, %62 : vector<8x256xf32>
    %85 = math.exp %84 : vector<8x256xf32>
    %86 = arith.mulf %81, %85 : vector<8x256xf32>
    %cst_45 = arith.constant 1.000000e+00 : f32
    %87 = vector.broadcast %cst_45 : f32 to vector<8x256xf32>
    %88 = arith.subf %87, %86 : vector<8x256xf32>
    %cst_46 = arith.constant 0.000000e+00 : f32
    %89 = vector.broadcast %cst_46 : f32 to vector<8x256xf32>
    %90 = arith.cmpf olt, %59, %89 : vector<8x256xf32>
    %cst_47 = arith.constant 0.000000e+00 : f32
    %91 = vector.broadcast %cst_47 : f32 to vector<8x256xf32>
    %92 = arith.subf %91, %88 : vector<8x256xf32>
    %93 = arith.select %90, %92, %88 : vector<8x256xi1>, vector<8x256xf32>
    %cst_48 = arith.constant 5.000000e-01 : f32
    %94 = vector.broadcast %cst_48 : f32 to vector<8x256xf32>
    %95 = arith.mulf %94, %59 : vector<8x256xf32>
    %cst_49 = arith.constant 1.000000e+00 : f32
    %96 = vector.broadcast %cst_49 : f32 to vector<8x256xf32>
    %97 = arith.addf %96, %93 : vector<8x256xf32>
    %98 = arith.mulf %95, %97 : vector<8x256xf32>
    %c0_50 = arith.constant 0 : index
    %c128_51 = arith.constant 128 : index
    %99 = vector.load %arg4[%c0_50, %c128_51] : memref<8x401xf32, #tpu.memory_space<vmem>>, vector<8x256xf32>
    tpu.vector_store %arg4[%c0_50, %c128_51], %98 {strides = array<i32>} : memref<8x401xf32, #tpu.memory_space<vmem>>, vector<8x256xf32>,
    %c0_52 = arith.constant 0 : index
    %c111_53 = arith.constant 111 : index
    %100 = vector.load %arg4[%c0_52, %c111_53] : memref<8x401xf32, #tpu.memory_space<vmem>>, vector<8x256xf32>
    %cst_54 = arith.constant 0.000000e+00 : f32
    %101 = vector.broadcast %cst_54 : f32 to vector<8x256xf32>
    %102 = arith.select %18, %100, %101 : vector<8x256xi1>, vector<8x256xf32>
    %c0_55 = arith.constant 0 : index
    %c112_56 = arith.constant 112 : index
    %103 = vector.load %arg4[%c0_55, %c112_56] : memref<8x401xf32, #tpu.memory_space<vmem>>, vector<8x256xf32>
    %c0_57 = arith.constant 0 : index
    %c113_58 = arith.constant 113 : index
    %104 = vector.load %arg4[%c0_57, %c113_58] : memref<8x401xf32, #tpu.memory_space<vmem>>, vector<8x256xf32>
    %cst_59 = arith.constant 0.000000e+00 : f32
    %105 = vector.broadcast %cst_59 : f32 to vector<8x256xf32>
    %106 = arith.select %20, %104, %105 : vector<8x256xi1>, vector<8x256xf32>
    %c0_60 = arith.constant 0 : index
    %c127_61 = arith.constant 127 : index
    %107 = vector.load %arg4[%c0_60, %c127_61] : memref<8x401xf32, #tpu.memory_space<vmem>>, vector<8x256xf32>
    %cst_62 = arith.constant 0.000000e+00 : f32
    %108 = vector.broadcast %cst_62 : f32 to vector<8x256xf32>
    %109 = arith.select %18, %107, %108 : vector<8x256xi1>, vector<8x256xf32>
    %c0_63 = arith.constant 0 : index
    %c128_64 = arith.constant 128 : index
    %110 = vector.load %arg4[%c0_63, %c128_64] : memref<8x401xf32, #tpu.memory_space<vmem>>, vector<8x256xf32>
    %c0_65 = arith.constant 0 : index
    %c129_66 = arith.constant 129 : index
    %111 = vector.load %arg4[%c0_65, %c129_66] : memref<8x401xf32, #tpu.memory_space<vmem>>, vector<8x256xf32>
    %cst_67 = arith.constant 0.000000e+00 : f32
    %112 = vector.broadcast %cst_67 : f32 to vector<8x256xf32>
    %113 = arith.select %20, %111, %112 : vector<8x256xi1>, vector<8x256xf32>
    %c0_68 = arith.constant 0 : index
    %c143_69 = arith.constant 143 : index
    %114 = vector.load %arg4[%c0_68, %c143_69] : memref<8x401xf32, #tpu.memory_space<vmem>>, vector<8x256xf32>
    %cst_70 = arith.constant 0.000000e+00 : f32
    %115 = vector.broadcast %cst_70 : f32 to vector<8x256xf32>
    %116 = arith.select %18, %114, %115 : vector<8x256xi1>, vector<8x256xf32>
    %c0_71 = arith.constant 0 : index
    %c144_72 = arith.constant 144 : index
    %117 = vector.load %arg4[%c0_71, %c144_72] : memref<8x401xf32, #tpu.memory_space<vmem>>, vector<8x256xf32>
    %c0_73 = arith.constant 0 : index
    %c145_74 = arith.constant 145 : index
    %118 = vector.load %arg4[%c0_73, %c145_74] : memref<8x401xf32, #tpu.memory_space<vmem>>, vector<8x256xf32>
    %cst_75 = arith.constant 0.000000e+00 : f32
    %119 = vector.broadcast %cst_75 : f32 to vector<8x256xf32>
    %120 = arith.select %20, %118, %119 : vector<8x256xi1>, vector<8x256xf32>
    %121 = tpu.concatenate %102, %103, %106, %109, %110, %113, %116, %117, %120 in 0 : vector<8x256xf32>, vector<8x256xf32>, vector<8x256xf32>, vector<8x256xf32>, vector<8x256xf32>, vector<8x256xf32>, vector<8x256xf32>, vector<8x256xf32>, vector<8x256xf32> -> vector<72x256xf32>
    %122 = arith.truncf %121 : vector<72x256xf32> to vector<72x256xbf16>
    %cst_76 = arith.constant dense<0.000000e+00> : vector<16x256xf32>
    %123 = tpu.matmul %29, %122, %cst_76 {dimension_numbers = #tpu.dot_dimension_numbers<[1], [0], [0], [1], [0, 0, 1, 1], [], []>} : vector<16x72xbf16>, vector<72x256xbf16>, vector<16x256xf32> -> vector<16x256xf32>
    %124 = vector.extract_strided_slice %58 {offsets = [8, 0], sizes = [8, 256], strides = [1, 1]} : vector<24x256xf32> to vector<8x256xf32>
    %125 = vector.extract_strided_slice %123 {offsets = [0, 0], sizes = [8, 256], strides = [1, 1]} : vector<16x256xf32> to vector<8x256xf32>
    %126 = arith.addf %124, %125 : vector<8x256xf32>
    %127 = math.absf %126 : vector<8x256xf32>
    %cst_77 = arith.constant 0.707106769 : f32
    %128 = vector.broadcast %cst_77 : f32 to vector<8x256xf32>
    %129 = arith.mulf %127, %128 : vector<8x256xf32>
    %cst_78 = arith.constant 0.327591091 : f32
    %130 = vector.broadcast %cst_78 : f32 to vector<8x256xf32>
    %131 = arith.mulf %130, %129 : vector<8x256xf32>
    %cst_79 = arith.constant 1.000000e+00 : f32
    %132 = vector.broadcast %cst_79 : f32 to vector<8x256xf32>
    %133 = arith.addf %132, %131 : vector<8x256xf32>
    %134 = tpu.reciprocal %133 {approx = true} : vector<8x256xf32> -> vector<8x256xf32>
    %cst_80 = arith.constant 1.06140542 : f32
    %135 = vector.broadcast %cst_80 : f32 to vector<8x256xf32>
    %136 = arith.mulf %134, %135 : vector<8x256xf32>
    %cst_81 = arith.constant -1.45315206 : f32
    %137 = vector.broadcast %cst_81 : f32 to vector<8x256xf32>
    %138 = arith.addf %137, %136 : vector<8x256xf32>
    %139 = arith.mulf %134, %138 : vector<8x256xf32>
    %cst_82 = arith.constant 1.42141378 : f32
    %140 = vector.broadcast %cst_82 : f32 to vector<8x256xf32>
    %141 = arith.addf %140, %139 : vector<8x256xf32>
    %142 = arith.mulf %134, %141 : vector<8x256xf32>
    %cst_83 = arith.constant -0.284496725 : f32
    %143 = vector.broadcast %cst_83 : f32 to vector<8x256xf32>
    %144 = arith.addf %143, %142 : vector<8x256xf32>
    %145 = arith.mulf %134, %144 : vector<8x256xf32>
    %cst_84 = arith.constant 0.254829586 : f32
    %146 = vector.broadcast %cst_84 : f32 to vector<8x256xf32>
    %147 = arith.addf %146, %145 : vector<8x256xf32>
    %148 = arith.mulf %134, %147 : vector<8x256xf32>
    %cst_85 = arith.constant 0.000000e+00 : f32
    %149 = vector.broadcast %cst_85 : f32 to vector<8x256xf32>
    %150 = arith.subf %149, %129 : vector<8x256xf32>
    %151 = arith.mulf %150, %129 : vector<8x256xf32>
    %152 = math.exp %151 : vector<8x256xf32>
    %153 = arith.mulf %148, %152 : vector<8x256xf32>
    %cst_86 = arith.constant 1.000000e+00 : f32
    %154 = vector.broadcast %cst_86 : f32 to vector<8x256xf32>
    %155 = arith.subf %154, %153 : vector<8x256xf32>
    %cst_87 = arith.constant 0.000000e+00 : f32
    %156 = vector.broadcast %cst_87 : f32 to vector<8x256xf32>
    %157 = arith.cmpf olt, %126, %156 : vector<8x256xf32>
    %cst_88 = arith.constant 0.000000e+00 : f32
    %158 = vector.broadcast %cst_88 : f32 to vector<8x256xf32>
    %159 = arith.subf %158, %155 : vector<8x256xf32>
    %160 = arith.select %157, %159, %155 : vector<8x256xi1>, vector<8x256xf32>
    %cst_89 = arith.constant 5.000000e-01 : f32
    %161 = vector.broadcast %cst_89 : f32 to vector<8x256xf32>
    %162 = arith.mulf %161, %126 : vector<8x256xf32>
    %cst_90 = arith.constant 1.000000e+00 : f32
    %163 = vector.broadcast %cst_90 : f32 to vector<8x256xf32>
    %164 = arith.addf %163, %160 : vector<8x256xf32>
    %165 = arith.mulf %162, %164 : vector<8x256xf32>
    %c0_91 = arith.constant 0 : index
    %c128_92 = arith.constant 128 : index
    %166 = vector.load %arg4[%c0_91, %c128_92] : memref<8x401xf32, #tpu.memory_space<vmem>>, vector<8x256xf32>
    tpu.vector_store %arg4[%c0_91, %c128_92], %165 {strides = array<i32>} : memref<8x401xf32, #tpu.memory_space<vmem>>, vector<8x256xf32>,
    %c0_93 = arith.constant 0 : index
    %c111_94 = arith.constant 111 : index
    %167 = vector.load %arg4[%c0_93, %c111_94] : memref<8x401xf32, #tpu.memory_space<vmem>>, vector<8x256xf32>
    %cst_95 = arith.constant 0.000000e+00 : f32
    %168 = vector.broadcast %cst_95 : f32 to vector<8x256xf32>
    %169 = arith.select %18, %167, %168 : vector<8x256xi1>, vector<8x256xf32>
    %c0_96 = arith.constant 0 : index
    %c112_97 = arith.constant 112 : index
    %170 = vector.load %arg4[%c0_96, %c112_97] : memref<8x401xf32, #tpu.memory_space<vmem>>, vector<8x256xf32>
    %c0_98 = arith.constant 0 : index
    %c113_99 = arith.constant 113 : index
    %171 = vector.load %arg4[%c0_98, %c113_99] : memref<8x401xf32, #tpu.memory_space<vmem>>, vector<8x256xf32>
    %cst_100 = arith.constant 0.000000e+00 : f32
    %172 = vector.broadcast %cst_100 : f32 to vector<8x256xf32>
    %173 = arith.select %20, %171, %172 : vector<8x256xi1>, vector<8x256xf32>
    %c0_101 = arith.constant 0 : index
    %c127_102 = arith.constant 127 : index
    %174 = vector.load %arg4[%c0_101, %c127_102] : memref<8x401xf32, #tpu.memory_space<vmem>>, vector<8x256xf32>
    %cst_103 = arith.constant 0.000000e+00 : f32
    %175 = vector.broadcast %cst_103 : f32 to vector<8x256xf32>
    %176 = arith.select %18, %174, %175 : vector<8x256xi1>, vector<8x256xf32>
    %c0_104 = arith.constant 0 : index
    %c128_105 = arith.constant 128 : index
    %177 = vector.load %arg4[%c0_104, %c128_105] : memref<8x401xf32, #tpu.memory_space<vmem>>, vector<8x256xf32>
    %c0_106 = arith.constant 0 : index
    %c129_107 = arith.constant 129 : index
    %178 = vector.load %arg4[%c0_106, %c129_107] : memref<8x401xf32, #tpu.memory_space<vmem>>, vector<8x256xf32>
    %cst_108 = arith.constant 0.000000e+00 : f32
    %179 = vector.broadcast %cst_108 : f32 to vector<8x256xf32>
    %180 = arith.select %20, %178, %179 : vector<8x256xi1>, vector<8x256xf32>
    %c0_109 = arith.constant 0 : index
    %c143_110 = arith.constant 143 : index
    %181 = vector.load %arg4[%c0_109, %c143_110] : memref<8x401xf32, #tpu.memory_space<vmem>>, vector<8x256xf32>
    %cst_111 = arith.constant 0.000000e+00 : f32
    %182 = vector.broadcast %cst_111 : f32 to vector<8x256xf32>
    %183 = arith.select %18, %181, %182 : vector<8x256xi1>, vector<8x256xf32>
    %c0_112 = arith.constant 0 : index
    %c144_113 = arith.constant 144 : index
    %184 = vector.load %arg4[%c0_112, %c144_113] : memref<8x401xf32, #tpu.memory_space<vmem>>, vector<8x256xf32>
    %c0_114 = arith.constant 0 : index
    %c145_115 = arith.constant 145 : index
    %185 = vector.load %arg4[%c0_114, %c145_115] : memref<8x401xf32, #tpu.memory_space<vmem>>, vector<8x256xf32>
    %cst_116 = arith.constant 0.000000e+00 : f32
    %186 = vector.broadcast %cst_116 : f32 to vector<8x256xf32>
    %187 = arith.select %20, %185, %186 : vector<8x256xi1>, vector<8x256xf32>
    %188 = tpu.concatenate %169, %170, %173, %176, %177, %180, %183, %184, %187 in 0 : vector<8x256xf32>, vector<8x256xf32>, vector<8x256xf32>, vector<8x256xf32>, vector<8x256xf32>, vector<8x256xf32>, vector<8x256xf32>, vector<8x256xf32>, vector<8x256xf32> -> vector<72x256xf32>
    %189 = arith.truncf %188 : vector<72x256xf32> to vector<72x256xbf16>
    %cst_117 = arith.constant dense<0.000000e+00> : vector<8x256xf32>
    %190 = tpu.matmul %31, %189, %cst_117 {dimension_numbers = #tpu.dot_dimension_numbers<[1], [0], [0], [1], [0, 0, 1, 1], [], []>} : vector<8x72xbf16>, vector<72x256xbf16>, vector<8x256xf32> -> vector<8x256xf32>
    %191 = vector.extract_strided_slice %58 {offsets = [16, 0], sizes = [8, 256], strides = [1, 1]} : vector<24x256xf32> to vector<8x256xf32>
    %192 = vector.extract_strided_slice %123 {offsets = [8, 0], sizes = [8, 256], strides = [1, 1]} : vector<16x256xf32> to vector<8x256xf32>
    %193 = arith.addf %191, %192 : vector<8x256xf32>
    %194 = arith.addf %193, %190 : vector<8x256xf32>
    %195 = math.absf %194 : vector<8x256xf32>
    %cst_118 = arith.constant 0.707106769 : f32
    %196 = vector.broadcast %cst_118 : f32 to vector<8x256xf32>
    %197 = arith.mulf %195, %196 : vector<8x256xf32>
    %cst_119 = arith.constant 0.327591091 : f32
    %198 = vector.broadcast %cst_119 : f32 to vector<8x256xf32>
    %199 = arith.mulf %198, %197 : vector<8x256xf32>
    %cst_120 = arith.constant 1.000000e+00 : f32
    %200 = vector.broadcast %cst_120 : f32 to vector<8x256xf32>
    %201 = arith.addf %200, %199 : vector<8x256xf32>
    %202 = tpu.reciprocal %201 {approx = true} : vector<8x256xf32> -> vector<8x256xf32>
    %cst_121 = arith.constant 1.06140542 : f32
    %203 = vector.broadcast %cst_121 : f32 to vector<8x256xf32>
    %204 = arith.mulf %202, %203 : vector<8x256xf32>
    %cst_122 = arith.constant -1.45315206 : f32
    %205 = vector.broadcast %cst_122 : f32 to vector<8x256xf32>
    %206 = arith.addf %205, %204 : vector<8x256xf32>
    %207 = arith.mulf %202, %206 : vector<8x256xf32>
    %cst_123 = arith.constant 1.42141378 : f32
    %208 = vector.broadcast %cst_123 : f32 to vector<8x256xf32>
    %209 = arith.addf %208, %207 : vector<8x256xf32>
    %210 = arith.mulf %202, %209 : vector<8x256xf32>
    %cst_124 = arith.constant -0.284496725 : f32
    %211 = vector.broadcast %cst_124 : f32 to vector<8x256xf32>
    %212 = arith.addf %211, %210 : vector<8x256xf32>
    %213 = arith.mulf %202, %212 : vector<8x256xf32>
    %cst_125 = arith.constant 0.254829586 : f32
    %214 = vector.broadcast %cst_125 : f32 to vector<8x256xf32>
    %215 = arith.addf %214, %213 : vector<8x256xf32>
    %216 = arith.mulf %202, %215 : vector<8x256xf32>
    %cst_126 = arith.constant 0.000000e+00 : f32
    %217 = vector.broadcast %cst_126 : f32 to vector<8x256xf32>
    %218 = arith.subf %217, %197 : vector<8x256xf32>
    %219 = arith.mulf %218, %197 : vector<8x256xf32>
    %220 = math.exp %219 : vector<8x256xf32>
    %221 = arith.mulf %216, %220 : vector<8x256xf32>
    %cst_127 = arith.constant 1.000000e+00 : f32
    %222 = vector.broadcast %cst_127 : f32 to vector<8x256xf32>
    %223 = arith.subf %222, %221 : vector<8x256xf32>
    %cst_128 = arith.constant 0.000000e+00 : f32
    %224 = vector.broadcast %cst_128 : f32 to vector<8x256xf32>
    %225 = arith.cmpf olt, %194, %224 : vector<8x256xf32>
    %cst_129 = arith.constant 0.000000e+00 : f32
    %226 = vector.broadcast %cst_129 : f32 to vector<8x256xf32>
    %227 = arith.subf %226, %223 : vector<8x256xf32>
    %228 = arith.select %225, %227, %223 : vector<8x256xi1>, vector<8x256xf32>
    %cst_130 = arith.constant 5.000000e-01 : f32
    %229 = vector.broadcast %cst_130 : f32 to vector<8x256xf32>
    %230 = arith.mulf %229, %194 : vector<8x256xf32>
    %cst_131 = arith.constant 1.000000e+00 : f32
    %231 = vector.broadcast %cst_131 : f32 to vector<8x256xf32>
    %232 = arith.addf %231, %228 : vector<8x256xf32>
    %233 = arith.mulf %230, %232 : vector<8x256xf32>
    %234 = tpu.concatenate %25, %98, %165, %233, %21 in 0 : vector<8x256xf32>, vector<8x256xf32>, vector<8x256xf32>, vector<8x256xf32>, vector<8x256xf32> -> vector<40x256xf32>
    %235 = arith.truncf %234 : vector<40x256xf32> to vector<40x256xbf16>
    %cst_132 = arith.constant dense<0.000000e+00> : vector<8x256xf32>
    %236 = tpu.matmul %33, %235, %cst_132 {dimension_numbers = #tpu.dot_dimension_numbers<[1], [0], [0], [1], [0, 0, 1, 1], [], []>} : vector<8x40xbf16>, vector<40x256xbf16>, vector<8x256xf32> -> vector<8x256xf32>
    %237 = arith.addf %236, %25 : vector<8x256xf32>
    %c1 = arith.constant 1 : index
    %c0_133 = arith.constant 0 : index
    %c0_134 = arith.constant 0 : index
    %238 = vector.load %arg2[%c1, %c0_133, %c0_134] : memref<2x56x80xbf16, #tpu.memory_space<vmem>>, vector<1x24x80xbf16>
    %239 = vector.shape_cast %238 : vector<1x24x80xbf16> to vector<24x80xbf16>
    %c1_135 = arith.constant 1 : index
    %c24_136 = arith.constant 24 : index
    %c0_137 = arith.constant 0 : index
    %240 = vector.load %arg2[%c1_135, %c24_136, %c0_137] : memref<2x56x80xbf16, #tpu.memory_space<vmem>>, vector<1x16x72xbf16>
    %241 = vector.shape_cast %240 : vector<1x16x72xbf16> to vector<16x72xbf16>
    %c1_138 = arith.constant 1 : index
    %c40_139 = arith.constant 40 : index
    %c0_140 = arith.constant 0 : index
    %242 = vector.load %arg2[%c1_138, %c40_139, %c0_140] : memref<2x56x80xbf16, #tpu.memory_space<vmem>>, vector<1x8x72xbf16>
    %243 = vector.shape_cast %242 : vector<1x8x72xbf16> to vector<8x72xbf16>
    %c1_141 = arith.constant 1 : index
    %c48_142 = arith.constant 48 : index
    %c0_143 = arith.constant 0 : index
    %244 = vector.load %arg2[%c1_141, %c48_142, %c0_143] : memref<2x56x80xbf16, #tpu.memory_space<vmem>>, vector<1x8x40xbf16>
    %245 = vector.shape_cast %244 : vector<1x8x40xbf16> to vector<8x40xbf16>
    %c0_144 = arith.constant 0 : index
    %c128_145 = arith.constant 128 : index
    %246 = vector.load %arg4[%c0_144, %c128_145] : memref<8x401xf32, #tpu.memory_space<vmem>>, vector<8x256xf32>
    tpu.vector_store %arg4[%c0_144, %c128_145], %237 {strides = array<i32>} : memref<8x401xf32, #tpu.memory_space<vmem>>, vector<8x256xf32>,
    %c0_146 = arith.constant 0 : index
    %c111_147 = arith.constant 111 : index
    %247 = vector.load %arg4[%c0_146, %c111_147] : memref<8x401xf32, #tpu.memory_space<vmem>>, vector<8x256xf32>
    %cst_148 = arith.constant 0.000000e+00 : f32
    %248 = vector.broadcast %cst_148 : f32 to vector<8x256xf32>
    %249 = arith.select %18, %247, %248 : vector<8x256xi1>, vector<8x256xf32>
    %c0_149 = arith.constant 0 : index
    %c112_150 = arith.constant 112 : index
    %250 = vector.load %arg4[%c0_149, %c112_150] : memref<8x401xf32, #tpu.memory_space<vmem>>, vector<8x256xf32>
    %c0_151 = arith.constant 0 : index
    %c113_152 = arith.constant 113 : index
    %251 = vector.load %arg4[%c0_151, %c113_152] : memref<8x401xf32, #tpu.memory_space<vmem>>, vector<8x256xf32>
    %cst_153 = arith.constant 0.000000e+00 : f32
    %252 = vector.broadcast %cst_153 : f32 to vector<8x256xf32>
    %253 = arith.select %20, %251, %252 : vector<8x256xi1>, vector<8x256xf32>
    %c0_154 = arith.constant 0 : index
    %c127_155 = arith.constant 127 : index
    %254 = vector.load %arg4[%c0_154, %c127_155] : memref<8x401xf32, #tpu.memory_space<vmem>>, vector<8x256xf32>
    %cst_156 = arith.constant 0.000000e+00 : f32
    %255 = vector.broadcast %cst_156 : f32 to vector<8x256xf32>
    %256 = arith.select %18, %254, %255 : vector<8x256xi1>, vector<8x256xf32>
    %c0_157 = arith.constant 0 : index
    %c128_158 = arith.constant 128 : index
    %257 = vector.load %arg4[%c0_157, %c128_158] : memref<8x401xf32, #tpu.memory_space<vmem>>, vector<8x256xf32>
    %c0_159 = arith.constant 0 : index
    %c129_160 = arith.constant 129 : index
    %258 = vector.load %arg4[%c0_159, %c129_160] : memref<8x401xf32, #tpu.memory_space<vmem>>, vector<8x256xf32>
    %cst_161 = arith.constant 0.000000e+00 : f32
    %259 = vector.broadcast %cst_161 : f32 to vector<8x256xf32>
    %260 = arith.select %20, %258, %259 : vector<8x256xi1>, vector<8x256xf32>
    %c0_162 = arith.constant 0 : index
    %c143_163 = arith.constant 143 : index
    %261 = vector.load %arg4[%c0_162, %c143_163] : memref<8x401xf32, #tpu.memory_space<vmem>>, vector<8x256xf32>
    %cst_164 = arith.constant 0.000000e+00 : f32
    %262 = vector.broadcast %cst_164 : f32 to vector<8x256xf32>
    %263 = arith.select %18, %261, %262 : vector<8x256xi1>, vector<8x256xf32>
    %c0_165 = arith.constant 0 : index
    %c144_166 = arith.constant 144 : index
    %264 = vector.load %arg4[%c0_165, %c144_166] : memref<8x401xf32, #tpu.memory_space<vmem>>, vector<8x256xf32>
    %c0_167 = arith.constant 0 : index
    %c145_168 = arith.constant 145 : index
    %265 = vector.load %arg4[%c0_167, %c145_168] : memref<8x401xf32, #tpu.memory_space<vmem>>, vector<8x256xf32>
    %cst_169 = arith.constant 0.000000e+00 : f32
    %266 = vector.broadcast %cst_169 : f32 to vector<8x256xf32>
    %267 = arith.select %20, %265, %266 : vector<8x256xi1>, vector<8x256xf32>
    %268 = tpu.concatenate %249, %250, %253, %256, %257, %260, %263, %264, %267, %21 in 0 : vector<8x256xf32>, vector<8x256xf32>, vector<8x256xf32>, vector<8x256xf32>, vector<8x256xf32>, vector<8x256xf32>, vector<8x256xf32>, vector<8x256xf32>, vector<8x256xf32>, vector<8x256xf32> -> vector<80x256xf32>
    %269 = arith.truncf %268 : vector<80x256xf32> to vector<80x256xbf16>
    %cst_170 = arith.constant dense<0.000000e+00> : vector<24x256xf32>
    %270 = tpu.matmul %239, %269, %cst_170 {dimension_numbers = #tpu.dot_dimension_numbers<[1], [0], [0], [1], [0, 0, 1, 1], [], []>} : vector<24x80xbf16>, vector<80x256xbf16>, vector<24x256xf32> -> vector<24x256xf32>
    %271 = vector.extract_strided_slice %270 {offsets = [0, 0], sizes = [8, 256], strides = [1, 1]} : vector<24x256xf32> to vector<8x256xf32>
    %272 = math.absf %271 : vector<8x256xf32>
    %cst_171 = arith.constant 0.707106769 : f32
    %273 = vector.broadcast %cst_171 : f32 to vector<8x256xf32>
    %274 = arith.mulf %272, %273 : vector<8x256xf32>
    %cst_172 = arith.constant 0.327591091 : f32
    %275 = vector.broadcast %cst_172 : f32 to vector<8x256xf32>
    %276 = arith.mulf %275, %274 : vector<8x256xf32>
    %cst_173 = arith.constant 1.000000e+00 : f32
    %277 = vector.broadcast %cst_173 : f32 to vector<8x256xf32>
    %278 = arith.addf %277, %276 : vector<8x256xf32>
    %279 = tpu.reciprocal %278 {approx = true} : vector<8x256xf32> -> vector<8x256xf32>
    %cst_174 = arith.constant 1.06140542 : f32
    %280 = vector.broadcast %cst_174 : f32 to vector<8x256xf32>
    %281 = arith.mulf %279, %280 : vector<8x256xf32>
    %cst_175 = arith.constant -1.45315206 : f32
    %282 = vector.broadcast %cst_175 : f32 to vector<8x256xf32>
    %283 = arith.addf %282, %281 : vector<8x256xf32>
    %284 = arith.mulf %279, %283 : vector<8x256xf32>
    %cst_176 = arith.constant 1.42141378 : f32
    %285 = vector.broadcast %cst_176 : f32 to vector<8x256xf32>
    %286 = arith.addf %285, %284 : vector<8x256xf32>
    %287 = arith.mulf %279, %286 : vector<8x256xf32>
    %cst_177 = arith.constant -0.284496725 : f32
    %288 = vector.broadcast %cst_177 : f32 to vector<8x256xf32>
    %289 = arith.addf %288, %287 : vector<8x256xf32>
    %290 = arith.mulf %279, %289 : vector<8x256xf32>
    %cst_178 = arith.constant 0.254829586 : f32
    %291 = vector.broadcast %cst_178 : f32 to vector<8x256xf32>
    %292 = arith.addf %291, %290 : vector<8x256xf32>
    %293 = arith.mulf %279, %292 : vector<8x256xf32>
    %cst_179 = arith.constant 0.000000e+00 : f32
    %294 = vector.broadcast %cst_179 : f32 to vector<8x256xf32>
    %295 = arith.subf %294, %274 : vector<8x256xf32>
    %296 = arith.mulf %295, %274 : vector<8x256xf32>
    %297 = math.exp %296 : vector<8x256xf32>
    %298 = arith.mulf %293, %297 : vector<8x256xf32>
    %cst_180 = arith.constant 1.000000e+00 : f32
    %299 = vector.broadcast %cst_180 : f32 to vector<8x256xf32>
    %300 = arith.subf %299, %298 : vector<8x256xf32>
    %cst_181 = arith.constant 0.000000e+00 : f32
    %301 = vector.broadcast %cst_181 : f32 to vector<8x256xf32>
    %302 = arith.cmpf olt, %271, %301 : vector<8x256xf32>
    %cst_182 = arith.constant 0.000000e+00 : f32
    %303 = vector.broadcast %cst_182 : f32 to vector<8x256xf32>
    %304 = arith.subf %303, %300 : vector<8x256xf32>
    %305 = arith.select %302, %304, %300 : vector<8x256xi1>, vector<8x256xf32>
    %cst_183 = arith.constant 5.000000e-01 : f32
    %306 = vector.broadcast %cst_183 : f32 to vector<8x256xf32>
    %307 = arith.mulf %306, %271 : vector<8x256xf32>
    %cst_184 = arith.constant 1.000000e+00 : f32
    %308 = vector.broadcast %cst_184 : f32 to vector<8x256xf32>
    %309 = arith.addf %308, %305 : vector<8x256xf32>
    %310 = arith.mulf %307, %309 : vector<8x256xf32>
    %c0_185 = arith.constant 0 : index
    %c128_186 = arith.constant 128 : index
    %311 = vector.load %arg4[%c0_185, %c128_186] : memref<8x401xf32, #tpu.memory_space<vmem>>, vector<8x256xf32>
    tpu.vector_store %arg4[%c0_185, %c128_186], %310 {strides = array<i32>} : memref<8x401xf32, #tpu.memory_space<vmem>>, vector<8x256xf32>,
    %c0_187 = arith.constant 0 : index
    %c111_188 = arith.constant 111 : index
    %312 = vector.load %arg4[%c0_187, %c111_188] : memref<8x401xf32, #tpu.memory_space<vmem>>, vector<8x256xf32>
    %cst_189 = arith.constant 0.000000e+00 : f32
    %313 = vector.broadcast %cst_189 : f32 to vector<8x256xf32>
    %314 = arith.select %18, %312, %313 : vector<8x256xi1>, vector<8x256xf32>
    %c0_190 = arith.constant 0 : index
    %c112_191 = arith.constant 112 : index
    %315 = vector.load %arg4[%c0_190, %c112_191] : memref<8x401xf32, #tpu.memory_space<vmem>>, vector<8x256xf32>
    %c0_192 = arith.constant 0 : index
    %c113_193 = arith.constant 113 : index
    %316 = vector.load %arg4[%c0_192, %c113_193] : memref<8x401xf32, #tpu.memory_space<vmem>>, vector<8x256xf32>
    %cst_194 = arith.constant 0.000000e+00 : f32
    %317 = vector.broadcast %cst_194 : f32 to vector<8x256xf32>
    %318 = arith.select %20, %316, %317 : vector<8x256xi1>, vector<8x256xf32>
    %c0_195 = arith.constant 0 : index
    %c127_196 = arith.constant 127 : index
    %319 = vector.load %arg4[%c0_195, %c127_196] : memref<8x401xf32, #tpu.memory_space<vmem>>, vector<8x256xf32>
    %cst_197 = arith.constant 0.000000e+00 : f32
    %320 = vector.broadcast %cst_197 : f32 to vector<8x256xf32>
    %321 = arith.select %18, %319, %320 : vector<8x256xi1>, vector<8x256xf32>
    %c0_198 = arith.constant 0 : index
    %c128_199 = arith.constant 128 : index
    %322 = vector.load %arg4[%c0_198, %c128_199] : memref<8x401xf32, #tpu.memory_space<vmem>>, vector<8x256xf32>
    %c0_200 = arith.constant 0 : index
    %c129_201 = arith.constant 129 : index
    %323 = vector.load %arg4[%c0_200, %c129_201] : memref<8x401xf32, #tpu.memory_space<vmem>>, vector<8x256xf32>
    %cst_202 = arith.constant 0.000000e+00 : f32
    %324 = vector.broadcast %cst_202 : f32 to vector<8x256xf32>
    %325 = arith.select %20, %323, %324 : vector<8x256xi1>, vector<8x256xf32>
    %c0_203 = arith.constant 0 : index
    %c143_204 = arith.constant 143 : index
    %326 = vector.load %arg4[%c0_203, %c143_204] : memref<8x401xf32, #tpu.memory_space<vmem>>, vector<8x256xf32>
    %cst_205 = arith.constant 0.000000e+00 : f32
    %327 = vector.broadcast %cst_205 : f32 to vector<8x256xf32>
    %328 = arith.select %18, %326, %327 : vector<8x256xi1>, vector<8x256xf32>
    %c0_206 = arith.constant 0 : index
    %c144_207 = arith.constant 144 : index
    %329 = vector.load %arg4[%c0_206, %c144_207] : memref<8x401xf32, #tpu.memory_space<vmem>>, vector<8x256xf32>
    %c0_208 = arith.constant 0 : index
    %c145_209 = arith.constant 145 : index
    %330 = vector.load %arg4[%c0_208, %c145_209] : memref<8x401xf32, #tpu.memory_space<vmem>>, vector<8x256xf32>
    %cst_210 = arith.constant 0.000000e+00 : f32
    %331 = vector.broadcast %cst_210 : f32 to vector<8x256xf32>
    %332 = arith.select %20, %330, %331 : vector<8x256xi1>, vector<8x256xf32>
    %333 = tpu.concatenate %314, %315, %318, %321, %322, %325, %328, %329, %332 in 0 : vector<8x256xf32>, vector<8x256xf32>, vector<8x256xf32>, vector<8x256xf32>, vector<8x256xf32>, vector<8x256xf32>, vector<8x256xf32>, vector<8x256xf32>, vector<8x256xf32> -> vector<72x256xf32>
    %334 = arith.truncf %333 : vector<72x256xf32> to vector<72x256xbf16>
    %cst_211 = arith.constant dense<0.000000e+00> : vector<16x256xf32>
    %335 = tpu.matmul %241, %334, %cst_211 {dimension_numbers = #tpu.dot_dimension_numbers<[1], [0], [0], [1], [0, 0, 1, 1], [], []>} : vector<16x72xbf16>, vector<72x256xbf16>, vector<16x256xf32> -> vector<16x256xf32>
    %336 = vector.extract_strided_slice %270 {offsets = [8, 0], sizes = [8, 256], strides = [1, 1]} : vector<24x256xf32> to vector<8x256xf32>
    %337 = vector.extract_strided_slice %335 {offsets = [0, 0], sizes = [8, 256], strides = [1, 1]} : vector<16x256xf32> to vector<8x256xf32>
    %338 = arith.addf %336, %337 : vector<8x256xf32>
    %339 = math.absf %338 : vector<8x256xf32>
    %cst_212 = arith.constant 0.707106769 : f32
    %340 = vector.broadcast %cst_212 : f32 to vector<8x256xf32>
    %341 = arith.mulf %339, %340 : vector<8x256xf32>
    %cst_213 = arith.constant 0.327591091 : f32
    %342 = vector.broadcast %cst_213 : f32 to vector<8x256xf32>
    %343 = arith.mulf %342, %341 : vector<8x256xf32>
    %cst_214 = arith.constant 1.000000e+00 : f32
    %344 = vector.broadcast %cst_214 : f32 to vector<8x256xf32>
    %345 = arith.addf %344, %343 : vector<8x256xf32>
    %346 = tpu.reciprocal %345 {approx = true} : vector<8x256xf32> -> vector<8x256xf32>
    %cst_215 = arith.constant 1.06140542 : f32
    %347 = vector.broadcast %cst_215 : f32 to vector<8x256xf32>
    %348 = arith.mulf %346, %347 : vector<8x256xf32>
    %cst_216 = arith.constant -1.45315206 : f32
    %349 = vector.broadcast %cst_216 : f32 to vector<8x256xf32>
    %350 = arith.addf %349, %348 : vector<8x256xf32>
    %351 = arith.mulf %346, %350 : vector<8x256xf32>
    %cst_217 = arith.constant 1.42141378 : f32
    %352 = vector.broadcast %cst_217 : f32 to vector<8x256xf32>
    %353 = arith.addf %352, %351 : vector<8x256xf32>
    %354 = arith.mulf %346, %353 : vector<8x256xf32>
    %cst_218 = arith.constant -0.284496725 : f32
    %355 = vector.broadcast %cst_218 : f32 to vector<8x256xf32>
    %356 = arith.addf %355, %354 : vector<8x256xf32>
    %357 = arith.mulf %346, %356 : vector<8x256xf32>
    %cst_219 = arith.constant 0.254829586 : f32
    %358 = vector.broadcast %cst_219 : f32 to vector<8x256xf32>
    %359 = arith.addf %358, %357 : vector<8x256xf32>
    %360 = arith.mulf %346, %359 : vector<8x256xf32>
    %cst_220 = arith.constant 0.000000e+00 : f32
    %361 = vector.broadcast %cst_220 : f32 to vector<8x256xf32>
    %362 = arith.subf %361, %341 : vector<8x256xf32>
    %363 = arith.mulf %362, %341 : vector<8x256xf32>
    %364 = math.exp %363 : vector<8x256xf32>
    %365 = arith.mulf %360, %364 : vector<8x256xf32>
    %cst_221 = arith.constant 1.000000e+00 : f32
    %366 = vector.broadcast %cst_221 : f32 to vector<8x256xf32>
    %367 = arith.subf %366, %365 : vector<8x256xf32>
    %cst_222 = arith.constant 0.000000e+00 : f32
    %368 = vector.broadcast %cst_222 : f32 to vector<8x256xf32>
    %369 = arith.cmpf olt, %338, %368 : vector<8x256xf32>
    %cst_223 = arith.constant 0.000000e+00 : f32
    %370 = vector.broadcast %cst_223 : f32 to vector<8x256xf32>
    %371 = arith.subf %370, %367 : vector<8x256xf32>
    %372 = arith.select %369, %371, %367 : vector<8x256xi1>, vector<8x256xf32>
    %cst_224 = arith.constant 5.000000e-01 : f32
    %373 = vector.broadcast %cst_224 : f32 to vector<8x256xf32>
    %374 = arith.mulf %373, %338 : vector<8x256xf32>
    %cst_225 = arith.constant 1.000000e+00 : f32
    %375 = vector.broadcast %cst_225 : f32 to vector<8x256xf32>
    %376 = arith.addf %375, %372 : vector<8x256xf32>
    %377 = arith.mulf %374, %376 : vector<8x256xf32>
    %c0_226 = arith.constant 0 : index
    %c128_227 = arith.constant 128 : index
    %378 = vector.load %arg4[%c0_226, %c128_227] : memref<8x401xf32, #tpu.memory_space<vmem>>, vector<8x256xf32>
    tpu.vector_store %arg4[%c0_226, %c128_227], %377 {strides = array<i32>} : memref<8x401xf32, #tpu.memory_space<vmem>>, vector<8x256xf32>,
    %c0_228 = arith.constant 0 : index
    %c111_229 = arith.constant 111 : index
    %379 = vector.load %arg4[%c0_228, %c111_229] : memref<8x401xf32, #tpu.memory_space<vmem>>, vector<8x256xf32>
    %cst_230 = arith.constant 0.000000e+00 : f32
    %380 = vector.broadcast %cst_230 : f32 to vector<8x256xf32>
    %381 = arith.select %18, %379, %380 : vector<8x256xi1>, vector<8x256xf32>
    %c0_231 = arith.constant 0 : index
    %c112_232 = arith.constant 112 : index
    %382 = vector.load %arg4[%c0_231, %c112_232] : memref<8x401xf32, #tpu.memory_space<vmem>>, vector<8x256xf32>
    %c0_233 = arith.constant 0 : index
    %c113_234 = arith.constant 113 : index
    %383 = vector.load %arg4[%c0_233, %c113_234] : memref<8x401xf32, #tpu.memory_space<vmem>>, vector<8x256xf32>
    %cst_235 = arith.constant 0.000000e+00 : f32
    %384 = vector.broadcast %cst_235 : f32 to vector<8x256xf32>
    %385 = arith.select %20, %383, %384 : vector<8x256xi1>, vector<8x256xf32>
    %c0_236 = arith.constant 0 : index
    %c127_237 = arith.constant 127 : index
    %386 = vector.load %arg4[%c0_236, %c127_237] : memref<8x401xf32, #tpu.memory_space<vmem>>, vector<8x256xf32>
    %cst_238 = arith.constant 0.000000e+00 : f32
    %387 = vector.broadcast %cst_238 : f32 to vector<8x256xf32>
    %388 = arith.select %18, %386, %387 : vector<8x256xi1>, vector<8x256xf32>
    %c0_239 = arith.constant 0 : index
    %c128_240 = arith.constant 128 : index
    %389 = vector.load %arg4[%c0_239, %c128_240] : memref<8x401xf32, #tpu.memory_space<vmem>>, vector<8x256xf32>
    %c0_241 = arith.constant 0 : index
    %c129_242 = arith.constant 129 : index
    %390 = vector.load %arg4[%c0_241, %c129_242] : memref<8x401xf32, #tpu.memory_space<vmem>>, vector<8x256xf32>
    %cst_243 = arith.constant 0.000000e+00 : f32
    %391 = vector.broadcast %cst_243 : f32 to vector<8x256xf32>
    %392 = arith.select %20, %390, %391 : vector<8x256xi1>, vector<8x256xf32>
    %c0_244 = arith.constant 0 : index
    %c143_245 = arith.constant 143 : index
    %393 = vector.load %arg4[%c0_244, %c143_245] : memref<8x401xf32, #tpu.memory_space<vmem>>, vector<8x256xf32>
    %cst_246 = arith.constant 0.000000e+00 : f32
    %394 = vector.broadcast %cst_246 : f32 to vector<8x256xf32>
    %395 = arith.select %18, %393, %394 : vector<8x256xi1>, vector<8x256xf32>
    %c0_247 = arith.constant 0 : index
    %c144_248 = arith.constant 144 : index
    %396 = vector.load %arg4[%c0_247, %c144_248] : memref<8x401xf32, #tpu.memory_space<vmem>>, vector<8x256xf32>
    %c0_249 = arith.constant 0 : index
    %c145_250 = arith.constant 145 : index
    %397 = vector.load %arg4[%c0_249, %c145_250] : memref<8x401xf32, #tpu.memory_space<vmem>>, vector<8x256xf32>
    %cst_251 = arith.constant 0.000000e+00 : f32
    %398 = vector.broadcast %cst_251 : f32 to vector<8x256xf32>
    %399 = arith.select %20, %397, %398 : vector<8x256xi1>, vector<8x256xf32>
    %400 = tpu.concatenate %381, %382, %385, %388, %389, %392, %395, %396, %399 in 0 : vector<8x256xf32>, vector<8x256xf32>, vector<8x256xf32>, vector<8x256xf32>, vector<8x256xf32>, vector<8x256xf32>, vector<8x256xf32>, vector<8x256xf32>, vector<8x256xf32> -> vector<72x256xf32>
    %401 = arith.truncf %400 : vector<72x256xf32> to vector<72x256xbf16>
    %cst_252 = arith.constant dense<0.000000e+00> : vector<8x256xf32>
    %402 = tpu.matmul %243, %401, %cst_252 {dimension_numbers = #tpu.dot_dimension_numbers<[1], [0], [0], [1], [0, 0, 1, 1], [], []>} : vector<8x72xbf16>, vector<72x256xbf16>, vector<8x256xf32> -> vector<8x256xf32>
    %403 = vector.extract_strided_slice %270 {offsets = [16, 0], sizes = [8, 256], strides = [1, 1]} : vector<24x256xf32> to vector<8x256xf32>
    %404 = vector.extract_strided_slice %335 {offsets = [8, 0], sizes = [8, 256], strides = [1, 1]} : vector<16x256xf32> to vector<8x256xf32>
    %405 = arith.addf %403, %404 : vector<8x256xf32>
    %406 = arith.addf %405, %402 : vector<8x256xf32>
    %407 = math.absf %406 : vector<8x256xf32>
    %cst_253 = arith.constant 0.707106769 : f32
    %408 = vector.broadcast %cst_253 : f32 to vector<8x256xf32>
    %409 = arith.mulf %407, %408 : vector<8x256xf32>
    %cst_254 = arith.constant 0.327591091 : f32
    %410 = vector.broadcast %cst_254 : f32 to vector<8x256xf32>
    %411 = arith.mulf %410, %409 : vector<8x256xf32>
    %cst_255 = arith.constant 1.000000e+00 : f32
    %412 = vector.broadcast %cst_255 : f32 to vector<8x256xf32>
    %413 = arith.addf %412, %411 : vector<8x256xf32>
    %414 = tpu.reciprocal %413 {approx = true} : vector<8x256xf32> -> vector<8x256xf32>
    %cst_256 = arith.constant 1.06140542 : f32
    %415 = vector.broadcast %cst_256 : f32 to vector<8x256xf32>
    %416 = arith.mulf %414, %415 : vector<8x256xf32>
    %cst_257 = arith.constant -1.45315206 : f32
    %417 = vector.broadcast %cst_257 : f32 to vector<8x256xf32>
    %418 = arith.addf %417, %416 : vector<8x256xf32>
    %419 = arith.mulf %414, %418 : vector<8x256xf32>
    %cst_258 = arith.constant 1.42141378 : f32
    %420 = vector.broadcast %cst_258 : f32 to vector<8x256xf32>
    %421 = arith.addf %420, %419 : vector<8x256xf32>
    %422 = arith.mulf %414, %421 : vector<8x256xf32>
    %cst_259 = arith.constant -0.284496725 : f32
    %423 = vector.broadcast %cst_259 : f32 to vector<8x256xf32>
    %424 = arith.addf %423, %422 : vector<8x256xf32>
    %425 = arith.mulf %414, %424 : vector<8x256xf32>
    %cst_260 = arith.constant 0.254829586 : f32
    %426 = vector.broadcast %cst_260 : f32 to vector<8x256xf32>
    %427 = arith.addf %426, %425 : vector<8x256xf32>
    %428 = arith.mulf %414, %427 : vector<8x256xf32>
    %cst_261 = arith.constant 0.000000e+00 : f32
    %429 = vector.broadcast %cst_261 : f32 to vector<8x256xf32>
    %430 = arith.subf %429, %409 : vector<8x256xf32>
    %431 = arith.mulf %430, %409 : vector<8x256xf32>
    %432 = math.exp %431 : vector<8x256xf32>
    %433 = arith.mulf %428, %432 : vector<8x256xf32>
    %cst_262 = arith.constant 1.000000e+00 : f32
    %434 = vector.broadcast %cst_262 : f32 to vector<8x256xf32>
    %435 = arith.subf %434, %433 : vector<8x256xf32>
    %cst_263 = arith.constant 0.000000e+00 : f32
    %436 = vector.broadcast %cst_263 : f32 to vector<8x256xf32>
    %437 = arith.cmpf olt, %406, %436 : vector<8x256xf32>
    %cst_264 = arith.constant 0.000000e+00 : f32
    %438 = vector.broadcast %cst_264 : f32 to vector<8x256xf32>
    %439 = arith.subf %438, %435 : vector<8x256xf32>
    %440 = arith.select %437, %439, %435 : vector<8x256xi1>, vector<8x256xf32>
    %cst_265 = arith.constant 5.000000e-01 : f32
    %441 = vector.broadcast %cst_265 : f32 to vector<8x256xf32>
    %442 = arith.mulf %441, %406 : vector<8x256xf32>
    %cst_266 = arith.constant 1.000000e+00 : f32
    %443 = vector.broadcast %cst_266 : f32 to vector<8x256xf32>
    %444 = arith.addf %443, %440 : vector<8x256xf32>
    %445 = arith.mulf %442, %444 : vector<8x256xf32>
    %446 = tpu.concatenate %237, %310, %377, %445, %21 in 0 : vector<8x256xf32>, vector<8x256xf32>, vector<8x256xf32>, vector<8x256xf32>, vector<8x256xf32> -> vector<40x256xf32>
    %447 = arith.truncf %446 : vector<40x256xf32> to vector<40x256xbf16>
    %cst_267 = arith.constant dense<0.000000e+00> : vector<8x256xf32>
    %448 = tpu.matmul %245, %447, %cst_267 {dimension_numbers = #tpu.dot_dimension_numbers<[1], [0], [0], [1], [0, 0, 1, 1], [], []>} : vector<8x40xbf16>, vector<40x256xbf16>, vector<8x256xf32> -> vector<8x256xf32>
    %449 = arith.addf %448, %237 : vector<8x256xf32>
    %c0_268 = arith.constant 0 : index
    %c0_269 = arith.constant 0 : index
    %c0_270 = arith.constant 0 : index
    %450 = vector.load %arg3[%c0_268, %c0_269, %c0_270] : memref<1x8x256xf32, #tpu.memory_space<vmem>>, vector<1x8x256xf32>
    %451 = vector.shape_cast %450 : vector<1x8x256xf32> to vector<8x256xf32>
    %452 = vector.shape_cast %449 : vector<8x256xf32> to vector<1x8x256xf32>
    tpu.vector_store %arg3[%c0_268, %c0_269, %c0_270], %452 {strides = array<i32>} : memref<1x8x256xf32, #tpu.memory_space<vmem>>, vector<1x8x256xf32>,
    return
  }
  func.func @transform_0(%arg0: i32) -> (i32, i32, i32) {
    %c0_i32 = arith.constant 0 : i32
    %c0_i32_0 = arith.constant 0 : i32
    %c0_i32_1 = arith.constant 0 : i32
    return %arg0, %c0_i32, %c0_i32_0 : i32, i32, i32
  }
  func.func @transform_1(%arg0: i32) -> (i32, i32, i32) {
    %c0_i32 = arith.constant 0 : i32
    %c0_i32_0 = arith.constant 0 : i32
    %c0_i32_1 = arith.constant 0 : i32
    %c0_i32_2 = arith.constant 0 : i32
    return %c0_i32, %c0_i32_0, %c0_i32_1 : i32, i32, i32
  }
  func.func @transform_2(%arg0: i32) -> (i32, i32, i32) {
    %c0_i32 = arith.constant 0 : i32
    %c0_i32_0 = arith.constant 0 : i32
    %c0_i32_1 = arith.constant 0 : i32
    return %arg0, %c0_i32, %c0_i32_0 : i32, i32, i32
  }
}

</mosaic_0001>

<bundles_post_ra>
// kernel: dblock_forward.1
= control target key start
LH: loop header
LB: loop body
LE: loop exit
PB: predicated region body
PF: predicated region fallthrough
CT: control target
= control target key end

     0   :  { %s2258_s9 = smov 0   ;;  %s2887_s0 = inlined_call_operand.vmem [shape: f32[2,8,256], index: 0, kind: input, shape index: {}]   ;;  %s2888_s1 = inlined_call_operand.vmem [shape: bf16[2,56,80], index: 1, kind: input, shape index: {}]   ;;  %s2889_s2 = inlined_call_operand.vmem [shape: f32[2,8,256], index: 2, kind: output, shape index: {}]  }
   0x1 LB: > { %s1706_s10 = sadd.s32 4294967295, %s2228_s9   ;;  %p1710_p0 = scmp.ge.s32.totalorder %s2228_s9, 1  ;;  %s2228_s9 = sphi %s2258_s9, %s12_s9  }
   0x2   : > { %p112_p1 = scmp.lt.s32.totalorder %s2228_s9, 3 }
   0x4   : > { %p113_p2 = pnand %p1710_p0, %p112_p1 }
   0x5   : > { %p134_p3 = scmp.lt.s32.totalorder (!%p113_p2), %s1706_s10, 1  ;;  %s2231_s15 = smov (!%p113_p2), 113  }
   0x6   : > { %116 = sbr.rel (%p113_p2) target bundleno = 2794 (0xaea), region = 28  ;;  %s2232_s16 = smov (!%p113_p2), 111  }
   0x7   : > { %s2233_s17 = smov (!%p113_p2), 112   ;;  %s2234_s18 = smov (!%p113_p2), 127  }
   0x8   : > { %s2235_s19 = smov (!%p113_p2), 1   ;;  %s2236_s20 = smov (!%p113_p2), 15  }
   0x9   : > { %s2238_s21 = smov (!%p113_p2), 16   ;;  %s2239_s22 = smov (!%p113_p2), 17  }
   0xb   : > { %vm2893_vm0 = vcmask 138240   ;;  %v2230_v0 = vmov 0.0   ;;  %s3005_s10 = smov (!%p134_p3, %s1706_s10), 1  ;;  %v2237_v6 = vmov 0   ;;  %v145_v7 = vlaneseq  ;;  %v1809_v61 = vld [vmem:[%s2888_s1 + $0x30] sm:$0xf] }
   0xc   : > { %180 = vst.msk [vmem:[#allocation2 + $0x18] sm:$0xff] %vm2893_vm0, %v2230_v0  ;;  %176 = vst [vmem:[#allocation2] sm:$0xff] %v2230_v0  ;;  %s1902_s11 = sshll.u32 %s3005_s10, 4  ;;  %356 = vmatprep.mubr.bf16.mxu0 %v2237_v6  ;;  %587 = vmatprep.mubr.bf16.mxu1 %v2237_v6  ;;  %vm2897_vm1 = vcmask 908288   ;;  %vm2240_vm4 = vmmov 1   ;;  %vm2890_vm6 = vcmask 924672  }
   0xd   : > { %s2277_s14 = scalar_lea.vmem %s2887_s0, %s1902_s11  ;;  %v146_v8 = vand.u32 127, %v145_v7  ;;  %vm2891_vm7 = vcmask 916480   ;;  %v2241_v25 = vmov 1.0   ;;  %vm2892_vm13 = vcmask 1039360  }
   0xe   : > { %v2280_v1 = vld [vmem:[%s2277_s14 + $0x8] sm:$0xff]  ;;  %v2289_v4 = vld [vmem:[%s2277_s14] sm:$0xff]  ;;  %vm229_vm15 = vcmask 7168  }
   0xf   : > { %v1950_v5 = vpack.i.bf16 %v2280_v1, %v2289_v4  ;;  %v147_v9 = vadd.s32 128, %v146_v8  ;;  %v152_v11 = vand.u32 15, %v146_v8 }
  0x11   : > { %v159_v10 = vand.u32 15, %v147_v9  ;;  %vm2325_vm3 = vcmp.lt.s32.totalorder %v152_v11, 15  ;;  %vm2353_vm10 = vcmp.gt.s32.totalorder %v152_v11, 0 }
  0x12   : > { %vm2346_vm9 = vmpackc.low %vm2240_vm4, %vm2325_vm3 }
  0x13   : > { %v2282_v2 = vld [vmem:[#allocation2 + $0x18] sm:$0xff]  ;;  %vm2321_vm2 = vcmp.lt.s32.totalorder %v159_v10, 15  ;;  %vm2337_vm8 = vcmp.gt.s32.totalorder %v159_v10, 0  ;;  %vm2372_vm12 = vmpackc.low %vm2240_vm4, %vm2353_vm10 }
  0x14   : > { %v1930_v3 = vpack.i.bf16 %v2282_v2, %v2280_v1  ;;  %vm2333_vm5 = vmpackc.low %vm2240_vm4, %vm2321_vm2 }
  0x15   : > { %vm2362_vm11 = vmpackc.low %vm2240_vm4, %vm2337_vm8 }
  0x16   : > { %1931 = vrot.lane.b32.xlu1 %v1930_v3, %s2231_s15  ;;  %1926 = vrot.lane.b32.xlu0 %v1930_v3, %s2232_s16  ;;  %vm2386_vm14 = vmpackc.low %vm2321_vm2, %vm2240_vm4 }
  0x1a   : > { %1936 = vrot.lane.b32.xlu1 %v1930_v3, %s2233_s17  ;;  %264 = vrot.lane.b32.xlu0 %v2289_v4, %s2232_s16 }
  0x1e   : > { %288 = vrot.lane.b32.xlu1 %v2289_v4, %s2233_s17  ;;  %251 = vrot.lane.b32.xlu0 %v2289_v4, %s2231_s15 }
  0x22   : > { %238 = vrot.lane.b32.xlu1 %v2289_v4, %s2234_s18  ;;  %1941 = vrot.lane.b32.xlu0 %v1930_v3, %s2234_s18 }
  0x26   : > { %1951 = vrot.lane.b32.xlu1 %v1950_v5, %s2235_s19  ;;  %1946 = vrot.lane.b32.xlu0 %v1950_v5, %s2236_s20 }
  0x2a   : > { %223 = vrot.lane.b32.xlu1 %v2230_v0, %s2235_s19  ;;  %210 = vrot.lane.b32.xlu0 %v2230_v0, %s2236_s20 }
  0x2e   : > { %1961 = vrot.lane.b32.xlu1 %v1950_v5, %s2238_s21  ;;  %1956 = vrot.lane.b32.xlu0 %v1950_v5, %s2239_s22 }
  0x32   : > { %277 = vrot.lane.b32.xlu1 %v2230_v0, %s2238_s21  ;;  %198 = vrot.lane.b32.xlu0 %v2230_v0, %s2239_s22 }
  0x36   : > { %501 = vrot.lane.b32.xlu1 %v2282_v2, %s2232_s16  ;;  %447 = vrot.lane.b32.xlu0 %v2230_v0, %s2236_s20 }
  0x88   : > { %v1932_v12 = vpop.permute.xlu1 %1931  ;;  %v1927_v13 = vpop.permute.xlu0 %1926 }
  0x89   : > { %v1929_v15 = vunpack.i.h.bf16 %v1927_v13  ;;  %v1928_v16 = vunpack.i.l.bf16 %v1927_v13  ;;  %v1934_v18 = vunpack.i.h.bf16 %v1932_v12  ;;  %v1933_v19 = vunpack.i.l.bf16 %v1932_v12 }
  0x8b   : > { %v272_v20 = vsel %vm2897_vm1, %v1928_v16, %v1929_v15  ;;  %v259_v33 = vsel %vm2890_vm6, %v1933_v19, %v1934_v18 }
  0x8c   : > { %v1937_v22 = vpop.permute.xlu1 %1936  ;;  %v265_v23 = vpop.permute.xlu0 %264  ;;  %v1718_v26 = vpack.c.bf16 %v2241_v25, %v272_v20 }
  0x8d   : > { %v1939_v27 = vunpack.i.h.bf16 %v1937_v22  ;;  %v1938_v28 = vunpack.i.l.bf16 %v1937_v22  ;;  %v271_v29 = vsel %vm2897_vm1, %v265_v23, %v1928_v16 }
  0x8e   : > { %v1721_v31 = vpack.c.bf16 %v2241_v25, %v271_v29  ;;  %1719 = vmatprep.subr.msk.bf16.mxu0 %vm2333_vm5, %v1718_v26  ;;  %v2165_v26 = vld [vmem:[%s2888_s1] sm:$0xff]  }
  0x8f   : > { %v296_v34 = vsel %vm2891_vm7, %v1938_v28, %v1939_v27 }
  0x90   : > { %v1724_v36 = vpack.c.bf16 %v296_v34, %v259_v33  ;;  %v289_v37 = vpop.permute.xlu1 %288  ;;  %1722 = vmatpush1.bf16.msk.msra.mxu0 %vm2346_vm9, %v1721_v31  ;;  %v252_v38 = vpop.permute.xlu0 %251 }
  0x91   : > { %v295_v39 = vsel %vm2891_vm7, %v289_v37, %v1938_v28  ;;  %v258_v41 = vsel %vm2890_vm6, %v252_v38, %v1933_v19  ;;  %vm2896_vm6 = vcmask 121856   ;;  %vm2395_vm7 = vmpackc.low %vm2325_vm3, %vm2240_vm4 }
  0x92   : > { %v1727_v42 = vpack.c.bf16 %v295_v39, %v258_v41  ;;  %1725 = vmatprep.subr.msk.bf16.mxu0 %vm2362_vm11, %v1724_v36  ;;  %vm2409_vm4 = vmpackc.low %vm2337_vm8, %vm2321_vm2  ;;  %vm2894_vm8 = vcmask 130048  }
  0x94   : > { %v239_v43 = vpop.permute.xlu1 %238  ;;  %1728 = vmatpush1.bf16.msk.msra.mxu0 %vm2372_vm12, %v1727_v42  ;;  %v1942_v44 = vpop.permute.xlu0 %1941 }
  0x95   : > { %v1944_v45 = vunpack.i.h.bf16 %v1942_v44  ;;  %v1943_v46 = vunpack.i.l.bf16 %v1942_v44 }
  0x97   : > { %v245_v47 = vsel %vm2892_vm13, %v239_v43, %v1943_v46  ;;  %v246_v48 = vsel %vm2892_vm13, %v1943_v46, %v1944_v45  ;;  %vm2419_vm13 = vmpackc.low %vm2353_vm10, %vm2325_vm3  ;;  %vm2895_vm10 = vcmask 654336  }
  0x98   : > { %v1730_v50 = vpack.c.bf16 %v246_v48, %v2280_v1  ;;  %v1733_v51 = vpack.c.bf16 %v245_v47, %v2289_v4  ;;  %v1952_v52 = vpop.permute.xlu1 %1951  ;;  %v1947_v53 = vpop.permute.xlu0 %1946 }
  0x99   : > { %v1954_v55 = vunpack.i.h.bf16 %v1952_v52  ;;  %v1953_v56 = vunpack.i.l.bf16 %v1952_v52  ;;  %v1949_v57 = vunpack.i.h.bf16 %v1947_v53  ;;  %v1948_v58 = vunpack.i.l.bf16 %v1947_v53 }
  0x9a   : > { %1731 = vmatprep.subr.msk.bf16.mxu0 %vm2386_vm14, %v1730_v50 }
  0x9b   : > { %v231_v59 = vsel %vm229_vm15, %v1953_v56, %v1954_v55  ;;  %v218_v60 = vsel %vm2896_vm6, %v1948_v58, %v1949_v57  ;;  %1734 = vmatpush1.bf16.msk.msra.mxu0 %vm2395_vm7, %v1733_v51 }
  0x9c   : > { %v1736_v62 = vpack.c.bf16 %v231_v59, %v218_v60  ;;  %v224_v63 = vpop.permute.xlu1 %223  ;;  %v211_v1 = vpop.permute.xlu0 %210 }
  0x9d   : > { %v230_v3 = vsel %vm229_vm15, %v224_v63, %v1953_v56  ;;  %v217_v4 = vsel %vm2896_vm6, %v211_v1, %v1948_v58  ;;  %vm2927_vm6 = vcmask 924672  }
  0x9e   : > { %v1739_v7 = vpack.c.bf16 %v230_v3, %v217_v4  ;;  %1737 = vmatprep.subr.msk.bf16.mxu0 %vm2409_vm4, %v1736_v62 }
  0xa0   : > { %v1962_v8 = vpop.permute.xlu1 %1961  ;;  %v1957_v9 = vpop.permute.xlu0 %1956  ;;  %1740 = vmatpush1.bf16.msk.msra.mxu0 %vm2419_vm13, %v1739_v7 }
  0xa1   : > { %v1964_v10 = vunpack.i.h.bf16 %v1962_v8  ;;  %v1963_v11 = vunpack.i.l.bf16 %v1962_v8  ;;  %v1959_v12 = vunpack.i.h.bf16 %v1957_v9  ;;  %v1958_v13 = vunpack.i.l.bf16 %v1957_v9 }
  0xa3   : > { %v285_v15 = vsel %vm2894_vm8, %v1963_v11, %v1964_v10  ;;  %v205_v16 = vsel %vm2893_vm0, %v1958_v13, %v1959_v12 }
  0xa4   : > { %v1742_v18 = vpack.c.bf16 %v285_v15, %v205_v16  ;;  %v278_v19 = vpop.permute.xlu1 %277  ;;  %v199_v20 = vpop.permute.xlu0 %198 }
  0xa5   : > { %v284_v22 = vsel %vm2894_vm8, %v278_v19, %v1963_v11  ;;  %v204_v23 = vsel %vm2893_vm0, %v199_v20, %v1958_v13 }
  0xa6   : > { %v1745_v24 = vpack.c.bf16 %v284_v22, %v204_v23  ;;  %1743 = vmatprep.subr.msk.bf16.mxu0 %vm2362_vm11, %v1742_v18 }
  0xa8   : > { %1746 = vmatpush1.bf16.msk.msra.mxu0 %vm2372_vm12, %v1745_v24 }
  0xab   : > { %1747 = vmatmul.mubr.msk.bf16.vlgmr.msra.gmra.mxu0 %vm2895_vm10, %v2165_v26 }
  0xac   : > { %366 = vmatprep.mubr.bf16.mxu0 %v2237_v6 }
 0x16b   : > { %v358_v27 = vpop.f32.mrf.mxu0 }
 0x16c   : > { %v375_v28 = vand.u32 2147483647, %v358_v27  ;;  %vm415_vm0 = vcmp.lt.f32.partialorder %v358_v27, 0.0  ;;  %v421_v19 = vmul.f32 0.5, %v358_v27 }
 0x16d   : > { %v360_v29 = vpop.f32.mrf.mxu0 }
 0x16e   : > { %v377_v31 = vmul.f32 0.70710677, %v375_v28  ;;  %v376_v32 = vand.u32 2147483647, %v360_v29  ;;  %vm416_vm8 = vcmp.lt.f32.partialorder %v360_v29, 0.0  ;;  %v422_v26 = vmul.f32 0.5, %v360_v29 }
 0x16f   : > { %v2167_v29 = vld [vmem:[%s2888_s1 + $0x8] ss:$0 sps:$4 sm:$0xff]  }
 0x170   : > { %v379_v33 = vmul.f32 0.3275911, %v377_v31  ;;  %v378_v34 = vmul.f32 0.70710677, %v376_v32  ;;  %v403_v39 = vsub.f32 0.0, %v377_v31  ;;  %1748 = vmatmul.mubr.msk.bf16.gmra.mxu0 %vm2895_vm10, %v2167_v29 }
 0x171   : > { %805 = vmatprep.mubr.bf16.mxu0 %v2237_v6 }
 0x172   : > { %v381_v36 = vadd.f32 1.0, %v379_v33  ;;  %v380_v37 = vmul.f32 0.3275911, %v378_v34  ;;  %v404_v41 = vsub.f32 0.0, %v378_v34  ;;  %v405_v42 = vmul.f32 %v403_v39, %v377_v31  ;;  %v502_v33 = vpop.permute.xlu1 %501 }
 0x174   : > { %2171 = vrcp.f32 %v381_v36  ;;  %v382_v38 = vadd.f32 1.0, %v380_v37  ;;  %v406_v44 = vmul.f32 %v404_v41, %v378_v34  ;;  %v407_v46 = vmul.f32 1.442695, %v405_v42  ;;  %v448_v34 = vpop.permute.xlu0 %447 }
 0x176   : > { %2173 = vrcp.f32 %v382_v38  ;;  %v409_v51 = vmul.f32 1.442695, %v406_v44 }
 0x177   : > { %2175 = vpow2.f32 %v407_v46 }
 0x178   : > { %2177 = vpow2.f32 %v409_v51 }
 0x181   : > { %v2172_v43 = vpop.eup %2171 }
 0x182   : > { %v385_v45 = vmul.f32 1.0614054, %v2172_v43 }
 0x183   : > { %v2174_v47 = vpop.eup %2173 }
 0x184   : > { %v387_v48 = vadd.f32 -1.4531521, %v385_v45  ;;  %v386_v50 = vmul.f32 1.0614054, %v2174_v47  ;;  %v2176_v7 = vpop.eup %2175 }
 0x185   : > { %v2178_v11 = vpop.eup %2177 }
 0x186   : > { %v389_v52 = vmul.f32 %v2172_v43, %v387_v48  ;;  %v388_v53 = vadd.f32 -1.4531521, %v386_v50 }
 0x188   : > { %v391_v55 = vadd.f32 1.4214138, %v389_v52  ;;  %v390_v56 = vmul.f32 %v2174_v47, %v388_v53 }
 0x18a   : > { %v393_v57 = vmul.f32 %v2172_v43, %v391_v55  ;;  %v392_v58 = vadd.f32 1.4214138, %v390_v56 }
 0x18c   : > { %v395_v59 = vadd.f32 -0.28449672, %v393_v57  ;;  %v394_v60 = vmul.f32 %v2174_v47, %v392_v58 }
 0x18e   : > { %v397_v62 = vmul.f32 %v2172_v43, %v395_v59  ;;  %v396_v63 = vadd.f32 -0.28449672, %v394_v60 }
 0x190   : > { %v399_v1 = vadd.f32 0.2548296, %v397_v62  ;;  %v398_v3 = vmul.f32 %v2174_v47, %v396_v63 }
 0x192   : > { %v401_v4 = vmul.f32 %v2172_v43, %v399_v1  ;;  %v400_v8 = vadd.f32 0.2548296, %v398_v3 }
 0x194   : > { %v411_v9 = vmul.f32 %v2176_v7, %v401_v4  ;;  %v402_v10 = vmul.f32 %v2174_v47, %v400_v8 }
 0x196   : > { %v413_v12 = vsub.f32 1.0, %v411_v9  ;;  %v412_v13 = vmul.f32 %v2178_v11, %v402_v10 }
 0x198   : > { %v417_v15 = vsub.f32 0.0, %v413_v12  ;;  %v414_v16 = vsub.f32 1.0, %v412_v13 }
 0x19a   : > { %v419_v18 = vsel %vm415_vm0, %v417_v15, %v413_v12  ;;  %v418_v22 = vsub.f32 0.0, %v414_v16  ;;  %vm2900_vm0 = vcmask 1043456  }
 0x19b   : > { %v423_v20 = vadd.f32 1.0, %v419_v18 }
 0x19c   : > { %v420_v24 = vsel %vm416_vm8, %v418_v22, %v414_v16  ;;  %vm2925_vm8 = vcmask 916480  }
 0x19d   : > { %v2440_v23 = vmul.f32 %v423_v20, %v421_v19  ;;  %v424_v28 = vadd.f32 1.0, %v420_v24  ;;  %vm2926_vm10 = vmmov %vm2925_vm8 }
 0x19f   : > { %519 = vrot.lane.b32.xlu1 %v2440_v23, %s2233_s17  ;;  %485 = vrot.lane.b32.xlu0 %v2440_v23, %s2231_s15  ;;  %v2446_v31 = vmul.f32 %v424_v28, %v422_v26 }
 0x1a1   : > { %v1965_v32 = vpack.i.bf16 %v2446_v31, %v2440_v23  ;;  %v1975_v27 = vpack.i.bf16 %v2282_v2, %v2446_v31 }
 0x1a3   : > { %473 = vrot.lane.b32.xlu1 %v2440_v23, %s2234_s18  ;;  %1966 = vrot.lane.b32.xlu0 %v1965_v32, %s2232_s16 }
 0x1a7   : > { %1976 = vrot.lane.b32.xlu1 %v1975_v27, %s2233_s17  ;;  %1971 = vrot.lane.b32.xlu0 %v1975_v27, %s2231_s15 }
 0x1ab   : > { %459 = vrot.lane.b32.xlu1 %v2230_v0, %s2235_s19  ;;  %1981 = vrot.lane.b32.xlu0 %v1975_v27, %s2234_s18 }
 0x1af   : > { %1991 = vrot.lane.b32.xlu1 %v1965_v32, %s2235_s19  ;;  %1986 = vrot.lane.b32.xlu0 %v1965_v32, %s2236_s20 }
 0x1b3   : > { %2001 = vrot.lane.b32.xlu1 %v1965_v32, %s2238_s21  ;;  %1996 = vrot.lane.b32.xlu0 %v1965_v32, %s2239_s22 }
 0x1b7   : > { %509 = vrot.lane.b32.xlu1 %v2230_v0, %s2238_s21  ;;  %435 = vrot.lane.b32.xlu0 %v2230_v0, %s2239_s22 }
 0x1bb   : > { %726 = vrot.lane.b32.xlu1 %v2282_v2, %s2232_s16  ;;  %672 = vrot.lane.b32.xlu0 %v2230_v0, %s2236_s20 }
 0x211   : > { %v520_v36 = vpop.permute.xlu1 %519  ;;  %v486_v37 = vpop.permute.xlu0 %485 }
 0x215   : > { %v474_v38 = vpop.permute.xlu1 %473  ;;  %v1967_v39 = vpop.permute.xlu0 %1966 }
 0x216   : > { %v1969_v41 = vunpack.i.h.bf16 %v1967_v39  ;;  %v1968_v42 = vunpack.i.l.bf16 %v1967_v39 }
 0x218   : > { %v504_v44 = vsel %vm2897_vm1, %v1969_v41, %v502_v33  ;;  %v503_v45 = vsel %vm2897_vm1, %v1968_v42, %v1969_v41  ;;  %vm2928_vm1 = vmmov %vm2927_vm6 }
 0x219   : > { %v1977_v43 = vpop.permute.xlu1 %1976  ;;  %v1972_v48 = vpop.permute.xlu0 %1971  ;;  %v508_v50 = vsel %vm2321_vm2, %v504_v44, 0.0  ;;  %v507_v51 = vsel %vm2325_vm3, %v503_v45, 0.0 }
 0x21a   : > { %v1979_v46 = vunpack.i.h.bf16 %v1977_v43  ;;  %v1978_v47 = vunpack.i.l.bf16 %v1977_v43  ;;  %v1974_v52 = vunpack.i.h.bf16 %v1972_v48  ;;  %v1973_v53 = vunpack.i.l.bf16 %v1972_v48  ;;  %v2166_v48 = vld [vmem:[%s2888_s1 + $0xc] sm:$0xff]  }
 0x21b   : > { %v538_v55 = vpack.c.bf16 %v508_v50, %v508_v50  ;;  %v537_v56 = vpack.c.bf16 %v507_v51, %v507_v51  ;;  %v362_v50 = vpop.f32.mrf.mxu0 }
 0x21c   : > { %v526_v57 = vsel %vm2925_vm8, %v1978_v47, %v1979_v46  ;;  %v525_v58 = vsel %vm2926_vm10, %v520_v36, %v1978_v47  ;;  %v491_v59 = vsel %vm2927_vm6, %v486_v37, %v1973_v53  ;;  %v492_v60 = vsel %vm2928_vm1, %v1973_v53, %v1974_v52 }
 0x21d   : > { %1750 = vmatprep.subr.msk.bf16.mxu1 %vm2900_vm0, %v538_v55  ;;  %v460_v62 = vpop.permute.xlu1 %459  ;;  %v550_v63 = vsel %vm2900_vm0, %v537_v56, 0  ;;  %v1752_v1 = vpack.c.bf16 %v526_v57, %v492_v60  ;;  %v1982_v3 = vpop.permute.xlu0 %1981  ;;  %v1755_v8 = vpack.c.bf16 %v525_v58, %v491_v59  ;;  %vm2929_vm8 = vcmask 1039360  }
 0x21e   : > { %562 = vmatpush1.bf16.msra.mxu1 %v550_v63  ;;  %v1984_v4 = vunpack.i.h.bf16 %v1982_v3  ;;  %v1983_v7 = vunpack.i.l.bf16 %v1982_v3  ;;  %vm2930_vm10 = vmmov %vm2929_vm8  ;;  %vm2931_vm1 = vcmask 121856   ;;  %v364_v51 = vpop.f32.mrf.mxu0 }
 0x21f   : > { %1753 = vmatprep.subr.msk.bf16.mxu1 %vm2362_vm11, %v1752_v1  ;;  %vm2932_vm6 = vmmov %vm2931_vm1 }
 0x220   : > { %v479_v9 = vsel %vm2929_vm8, %v474_v38, %v1983_v7  ;;  %v480_v10 = vsel %vm2930_vm10, %v1983_v7, %v1984_v4  ;;  %vm2933_vm8 = vcmask 130048   ;;  %vm2934_vm10 = vcmask 138240  }
 0x221   : > { %v1992_v11 = vpop.permute.xlu1 %1991  ;;  %v1758_v12 = vpack.c.bf16 %v480_v10, %v2446_v31  ;;  %v1987_v16 = vpop.permute.xlu0 %1986  ;;  %v1761_v20 = vpack.c.bf16 %v479_v9, %v2440_v23 }
 0x222   : > { %v1994_v13 = vunpack.i.h.bf16 %v1992_v11  ;;  %v1993_v15 = vunpack.i.l.bf16 %v1992_v11  ;;  %1756 = vmatpush1.bf16.msk.msra.mxu1 %vm2372_vm12, %v1755_v8  ;;  %v1989_v18 = vunpack.i.h.bf16 %v1987_v16  ;;  %v1988_v19 = vunpack.i.l.bf16 %v1987_v16 }
 0x223   : > { %1759 = vmatprep.subr.msk.bf16.mxu1 %vm2386_vm14, %v1758_v12 }
 0x224   : > { %v466_v22 = vsel %vm229_vm15, %v1993_v15, %v1994_v13  ;;  %v465_v24 = vsel %vm229_vm15, %v460_v62, %v1993_v15  ;;  %v453_v26 = vsel %vm2931_vm1, %v448_v34, %v1988_v19  ;;  %v454_v28 = vsel %vm2932_vm6, %v1988_v19, %v1989_v18  ;;  %vm2935_vm1 = vmmov %vm2933_vm8 }
 0x225   : > { %v2002_v32 = vpop.permute.xlu1 %2001  ;;  %v1764_v27 = vpack.c.bf16 %v466_v22, %v454_v28  ;;  %v1997_v36 = vpop.permute.xlu0 %1996  ;;  %v1767_v39 = vpack.c.bf16 %v465_v24, %v453_v26  ;;  %vm2936_vm6 = vmmov %vm2934_vm10 }
 0x226   : > { %v2004_v29 = vunpack.i.h.bf16 %v2002_v32  ;;  %v2003_v33 = vunpack.i.l.bf16 %v2002_v32  ;;  %1762 = vmatpush1.bf16.msk.msra.mxu1 %vm2395_vm7, %v1761_v20  ;;  %v1999_v37 = vunpack.i.h.bf16 %v1997_v36  ;;  %v1998_v38 = vunpack.i.l.bf16 %v1997_v36 }
 0x227   : > { %1765 = vmatprep.subr.msk.bf16.mxu1 %vm2409_vm4, %v1764_v27 }
 0x228   : > { %v516_v41 = vsel %vm2933_vm8, %v2003_v33, %v2004_v29  ;;  %v442_v34 = vsel %vm2934_vm10, %v1998_v38, %v1999_v37  ;;  %vm2898_vm8 = vcmask 588800  }
 0x229   : > { %v510_v42 = vpop.permute.xlu1 %509  ;;  %v1770_v43 = vpack.c.bf16 %v516_v41, %v442_v34  ;;  %v436_v45 = vpop.permute.xlu0 %435 }
 0x22a   : > { %v515_v44 = vsel %vm2935_vm1, %v510_v42, %v2003_v33  ;;  %1768 = vmatpush1.bf16.msk.msra.mxu1 %vm2419_vm13, %v1767_v39  ;;  %v441_v46 = vsel %vm2936_vm6, %v436_v45, %v1998_v38  ;;  %vm2937_vm6 = vcmask 908288  }
 0x22b   : > { %v1773_v47 = vpack.c.bf16 %v515_v44, %v441_v46  ;;  %1771 = vmatprep.subr.msk.bf16.mxu1 %vm2362_vm11, %v1770_v43 }
 0x22e   : > { %1774 = vmatpush1.bf16.msk.msra.mxu1 %vm2372_vm12, %v1773_v47 }
 0x230   : > { %v2522_v52 = vpop.f32.mrf.mxu0 }
 0x231   : > { %1775 = vmatmul.mubr.msk.bf16.vlgmr.msra.gmra.mxu1 %vm2898_vm8, %v2166_v48 }
 0x232   : > { %914 = vmatprep.mubr.bf16.mxu1 %v2237_v6  ;;  %v2524_v53 = vpop.f32.mrf.mxu0 }
 0x234   : > { %v372_v55 = vpop.f32.mrf.mxu0 }
 0x236   : > { %v373_v56 = vpop.f32.mrf.mxu0 }
 0x2f1   : > { %v589_v57 = vpop.f32.mrf.mxu1 }
 0x2f2   : > { %v598_v58 = vadd.f32 %v589_v57, %v362_v50 }
 0x2f3   : > { %v591_v59 = vpop.f32.mrf.mxu1 }
 0x2f4   : > { %v600_v60 = vand.u32 2147483647, %v598_v58  ;;  %v599_v62 = vadd.f32 %v591_v59, %v364_v51  ;;  %vm640_vm10 = vcmp.lt.f32.partialorder %v598_v58, 0.0  ;;  %v646_v57 = vmul.f32 0.5, %v598_v58 }
 0x2f6   : > { %v602_v63 = vmul.f32 0.70710677, %v600_v60  ;;  %v601_v1 = vand.u32 2147483647, %v599_v62  ;;  %vm641_vm1 = vcmp.lt.f32.partialorder %v599_v62, 0.0 }
 0x2f8   : > { %v604_v3 = vmul.f32 0.3275911, %v602_v63  ;;  %v603_v4 = vmul.f32 0.70710677, %v601_v1  ;;  %v628_v10 = vsub.f32 0.0, %v602_v63 }
 0x2fa   : > { %v606_v7 = vadd.f32 1.0, %v604_v3  ;;  %v605_v8 = vmul.f32 0.3275911, %v603_v4  ;;  %v629_v11 = vsub.f32 0.0, %v603_v4  ;;  %v630_v12 = vmul.f32 %v628_v10, %v602_v63 }
 0x2fb   : > { %v647_v3 = vmul.f32 0.5, %v599_v62  ;;  %v673_v62 = vpop.permute.xlu0 %672 }
 0x2fc   : > { %2179 = vrcp.f32 %v606_v7  ;;  %v607_v9 = vadd.f32 1.0, %v605_v8  ;;  %v631_v15 = vmul.f32 %v629_v11, %v603_v4  ;;  %v632_v18 = vmul.f32 1.442695, %v630_v12 }
 0x2fe   : > { %2181 = vrcp.f32 %v607_v9  ;;  %v634_v24 = vmul.f32 1.442695, %v631_v15 }
 0x2ff   : > { %2183 = vpow2.f32 %v632_v18 }
 0x300   : > { %2185 = vpow2.f32 %v634_v24 }
 0x309   : > { %v2180_v13 = vpop.eup %2179 }
 0x30a   : > { %v610_v16 = vmul.f32 1.0614054, %v2180_v13 }
 0x30b   : > { %v2182_v19 = vpop.eup %2181 }
 0x30c   : > { %v612_v20 = vadd.f32 -1.4531521, %v610_v16  ;;  %v611_v22 = vmul.f32 1.0614054, %v2182_v19  ;;  %v2184_v43 = vpop.eup %2183 }
 0x30d   : > { %v2186_v47 = vpop.eup %2185 }
 0x30e   : > { %v614_v26 = vmul.f32 %v2180_v13, %v612_v20  ;;  %v613_v28 = vadd.f32 -1.4531521, %v611_v22 }
 0x310   : > { %v616_v32 = vadd.f32 1.4214138, %v614_v26  ;;  %v615_v27 = vmul.f32 %v2182_v19, %v613_v28 }
 0x312   : > { %v618_v29 = vmul.f32 %v2180_v13, %v616_v32  ;;  %v617_v33 = vadd.f32 1.4214138, %v615_v27 }
 0x314   : > { %v620_v36 = vadd.f32 -0.28449672, %v618_v29  ;;  %v619_v37 = vmul.f32 %v2182_v19, %v617_v33 }
 0x316   : > { %v622_v38 = vmul.f32 %v2180_v13, %v620_v36  ;;  %v621_v39 = vadd.f32 -0.28449672, %v619_v37 }
 0x318   : > { %v624_v41 = vadd.f32 0.2548296, %v622_v38  ;;  %v623_v34 = vmul.f32 %v2182_v19, %v621_v39 }
 0x31a   : > { %v626_v42 = vmul.f32 %v2180_v13, %v624_v41  ;;  %v625_v44 = vadd.f32 0.2548296, %v623_v34 }
 0x31c   : > { %v636_v45 = vmul.f32 %v2184_v43, %v626_v42  ;;  %v627_v46 = vmul.f32 %v2182_v19, %v625_v44 }
 0x31e   : > { %v638_v48 = vsub.f32 1.0, %v636_v45  ;;  %v637_v50 = vmul.f32 %v2186_v47, %v627_v46 }
 0x320   : > { %v642_v51 = vsub.f32 0.0, %v638_v48  ;;  %v639_v55 = vsub.f32 1.0, %v637_v50 }
 0x322   : > { %v644_v56 = vsel %vm640_vm10, %v642_v51, %v638_v48  ;;  %v643_v60 = vsub.f32 0.0, %v639_v55  ;;  %vm2938_vm10 = vmmov %vm2937_vm6 }
 0x323   : > { %v648_v59 = vadd.f32 1.0, %v644_v56 }
 0x324   : > { %v645_v1 = vsel %vm641_vm1, %v643_v60, %v639_v55  ;;  %vm2939_vm1 = vcmask 916480  }
 0x325   : > { %v2526_v63 = vmul.f32 %v648_v59, %v646_v57  ;;  %v649_v4 = vadd.f32 1.0, %v645_v1  ;;  %vm2940_vm8 = vmmov %vm2939_vm1 }
 0x327   : > { %744 = vrot.lane.b32.xlu1 %v2526_v63, %s2233_s17  ;;  %710 = vrot.lane.b32.xlu0 %v2526_v63, %s2231_s15  ;;  %v2532_v7 = vmul.f32 %v649_v4, %v647_v3 }
 0x329   : > { %v2005_v8 = vpack.i.bf16 %v2532_v7, %v2526_v63  ;;  %v2015_v58 = vpack.i.bf16 %v2282_v2, %v2532_v7  ;;  %v727_v2 = vpop.permute.xlu1 %726 }
 0x32b   : > { %698 = vrot.lane.b32.xlu1 %v2526_v63, %s2234_s18  ;;  %2006 = vrot.lane.b32.xlu0 %v2005_v8, %s2232_s16 }
 0x32f   : > { %2016 = vrot.lane.b32.xlu1 %v2015_v58, %s2233_s17  ;;  %2011 = vrot.lane.b32.xlu0 %v2015_v58, %s2231_s15 }
 0x333   : > { %684 = vrot.lane.b32.xlu1 %v2230_v0, %s2235_s19  ;;  %2021 = vrot.lane.b32.xlu0 %v2015_v58, %s2234_s18 }
 0x337   : > { %2031 = vrot.lane.b32.xlu1 %v2005_v8, %s2235_s19  ;;  %2026 = vrot.lane.b32.xlu0 %v2005_v8, %s2236_s20 }
 0x33b   : > { %2041 = vrot.lane.b32.xlu1 %v2005_v8, %s2238_s21  ;;  %2036 = vrot.lane.b32.xlu0 %v2005_v8, %s2239_s22 }
 0x33f   : > { %734 = vrot.lane.b32.xlu1 %v2230_v0, %s2238_s21  ;;  %660 = vrot.lane.b32.xlu0 %v2230_v0, %s2239_s22 }
 0x343   : > { %951 = vrot.lane.b32.xlu0 %v2230_v0, %s2236_s20 }
 0x399   : > { %v745_v9 = vpop.permute.xlu1 %744  ;;  %v711_v10 = vpop.permute.xlu0 %710 }
 0x39d   : > { %v699_v11 = vpop.permute.xlu1 %698  ;;  %v2007_v12 = vpop.permute.xlu0 %2006 }
 0x39e   : > { %v2009_v13 = vunpack.i.h.bf16 %v2007_v12  ;;  %v2008_v15 = vunpack.i.l.bf16 %v2007_v12 }
 0x3a0   : > { %v729_v16 = vsel %vm2937_vm6, %v2009_v13, %v727_v2  ;;  %v728_v18 = vsel %vm2938_vm10, %v2008_v15, %v2009_v13  ;;  %vm2941_vm6 = vcmask 924672  }
 0x3a1   : > { %v2017_v19 = vpop.permute.xlu1 %2016  ;;  %v733_v20 = vsel %vm2321_vm2, %v729_v16, 0.0  ;;  %v2012_v26 = vpop.permute.xlu0 %2011  ;;  %v732_v0 = vsel %vm2325_vm3, %v728_v18, 0.0  ;;  %vm2942_vm10 = vmmov %vm2941_vm6 }
 0x3a2   : > { %v2019_v22 = vunpack.i.h.bf16 %v2017_v19  ;;  %v2018_v24 = vunpack.i.l.bf16 %v2017_v19  ;;  %v2014_v28 = vunpack.i.h.bf16 %v2012_v26  ;;  %v2013_v32 = vunpack.i.l.bf16 %v2012_v26 }
 0x3a3   : > { %v763_v27 = vpack.c.bf16 %v733_v20, %v733_v20  ;;  %v762_v29 = vpack.c.bf16 %v732_v0, %v732_v0  ;;  %v188_v0 = vld [vmem:[%s2888_s1 + $0x14] sm:$0xf] }
 0x3a4   : > { %v751_v33 = vsel %vm2939_vm1, %v2018_v24, %v2019_v22  ;;  %v750_v36 = vsel %vm2940_vm8, %v745_v9, %v2018_v24  ;;  %v716_v37 = vsel %vm2941_vm6, %v711_v10, %v2013_v32  ;;  %v717_v38 = vsel %vm2942_vm10, %v2013_v32, %v2014_v28 }
 0x3a5   : > { %1776 = vmatprep.subr.msk.bf16.mxu0 %vm2900_vm0, %v763_v27  ;;  %v685_v39 = vpop.permute.xlu1 %684  ;;  %v768_v41 = vsel %vm2900_vm0, %v762_v29, 0  ;;  %v1778_v34 = vpack.c.bf16 %v751_v33, %v717_v38  ;;  %v2022_v42 = vpop.permute.xlu0 %2021  ;;  %v1781_v45 = vpack.c.bf16 %v750_v36, %v716_v37  ;;  %vm2943_vm1 = vcmask 1039360  }
 0x3a6   : > { %780 = vmatpush1.bf16.msra.mxu0 %v768_v41  ;;  %v2024_v43 = vunpack.i.h.bf16 %v2022_v42  ;;  %v2023_v44 = vunpack.i.l.bf16 %v2022_v42  ;;  %vm2944_vm8 = vmmov %vm2943_vm1  ;;  %vm2945_vm6 = vcmask 121856   ;;  %v2603_v28 = vsel %vm2900_vm0, 1.0|1.0, %v2237_v6  ;;  %v593_v27 = vpop.f32.mrf.mxu1 }
 0x3a7   : > { %1779 = vmatprep.subr.msk.bf16.mxu0 %vm2362_vm11, %v1778_v34  ;;  %vm2946_vm10 = vmmov %vm2945_vm6  ;;  %v2242_v32 = vmov 1.0|1.0   ;;  %v814_v33 = vadd.f32 %v593_v27, %v2522_v52 }
 0x3a8   : > { %v704_v46 = vsel %vm2943_vm1, %v699_v11, %v2023_v44  ;;  %v705_v47 = vsel %vm2944_vm8, %v2023_v44, %v2024_v43  ;;  %vm2947_vm1 = vcmask 130048   ;;  %vm2948_vm8 = vcmask 138240   ;;  %1802 = vmatprep.subr.msk.bf16.mxu1 %vm2900_vm0, %v2242_v32  ;;  %v595_v29 = vpop.f32.mrf.mxu1 }
 0x3a9   : > { %v2032_v48 = vpop.permute.xlu1 %2031  ;;  %v1784_v50 = vpack.c.bf16 %v705_v47, %v2532_v7  ;;  %v2027_v56 = vpop.permute.xlu0 %2026  ;;  %v1787_v60 = vpack.c.bf16 %v704_v46, %v2526_v63  ;;  %893 = vmatpush1.bf16.msra.mxu1 %v2603_v28  ;;  %v815_v37 = vadd.f32 %v595_v29, %v2524_v53 }
 0x3aa   : > { %v2034_v51 = vunpack.i.h.bf16 %v2032_v48  ;;  %v2033_v55 = vunpack.i.l.bf16 %v2032_v48  ;;  %1782 = vmatpush1.bf16.msk.msra.mxu0 %vm2372_vm12, %v1781_v45  ;;  %v2029_v57 = vunpack.i.h.bf16 %v2027_v56  ;;  %v2028_v59 = vunpack.i.l.bf16 %v2027_v56 }
 0x3ab   : > { %1785 = vmatprep.subr.msk.bf16.mxu0 %vm2386_vm14, %v1784_v50 }
 0x3ac   : > { %v691_v1 = vsel %vm229_vm15, %v2033_v55, %v2034_v51  ;;  %v690_v3 = vsel %vm229_vm15, %v685_v39, %v2033_v55  ;;  %v678_v4 = vsel %vm2945_vm6, %v673_v62, %v2028_v59  ;;  %v679_v8 = vsel %vm2946_vm10, %v2028_v59, %v2029_v57  ;;  %vm2949_vm6 = vmmov %vm2947_vm1 }
 0x3ad   : > { %v2042_v58 = vpop.permute.xlu1 %2041  ;;  %v1790_v2 = vpack.c.bf16 %v691_v1, %v679_v8  ;;  %v2037_v11 = vpop.permute.xlu0 %2036  ;;  %v1793_v15 = vpack.c.bf16 %v690_v3, %v678_v4  ;;  %vm2950_vm10 = vmmov %vm2948_vm8 }
 0x3ae   : > { %v2044_v9 = vunpack.i.h.bf16 %v2042_v58  ;;  %v2043_v10 = vunpack.i.l.bf16 %v2042_v58  ;;  %1788 = vmatpush1.bf16.msk.msra.mxu0 %vm2395_vm7, %v1787_v60  ;;  %v2039_v12 = vunpack.i.h.bf16 %v2037_v11  ;;  %v2038_v13 = vunpack.i.l.bf16 %v2037_v11 }
 0x3af   : > { %1791 = vmatprep.subr.msk.bf16.mxu0 %vm2409_vm4, %v1790_v2 }
 0x3b0   : > { %v741_v16 = vsel %vm2947_vm1, %v2043_v10, %v2044_v9  ;;  %v667_v62 = vsel %vm2948_vm8, %v2038_v13, %v2039_v12  ;;  %vm2951_vm1 = vcmask 588800  }
 0x3b1   : > { %v735_v18 = vpop.permute.xlu1 %734  ;;  %v1796_v19 = vpack.c.bf16 %v741_v16, %v667_v62  ;;  %v661_v22 = vpop.permute.xlu0 %660 }
 0x3b2   : > { %v740_v20 = vsel %vm2949_vm6, %v735_v18, %v2043_v10  ;;  %1794 = vmatpush1.bf16.msk.msra.mxu0 %vm2419_vm13, %v1793_v15  ;;  %v666_v24 = vsel %vm2950_vm10, %v661_v22, %v2038_v13  ;;  %vm2899_vm10 = vcmask 326656  }
 0x3b3   : > { %v1799_v26 = vpack.c.bf16 %v740_v20, %v666_v24  ;;  %1797 = vmatprep.subr.msk.bf16.mxu0 %vm2362_vm11, %v1796_v19 }
 0x3b6   : > { %1800 = vmatpush1.bf16.msk.msra.mxu0 %vm2372_vm12, %v1799_v26 }
 0x3b9   : > { %1801 = vmatmul.mubr.msk.bf16.vlgmr.msra.gmra.mxu0 %vm2951_vm1, %v188_v0  ;;  %vm2952_vm1 = vcmask 908288  }
 0x3ba   : > { %1318 = vmatprep.mubr.bf16.mxu0 %v2237_v6 }
 0x479   : > { %v807_v36 = vpop.f32.mrf.mxu0 }
 0x47a   : > { %v816_v38 = vadd.f32 %v814_v33, %v807_v36 }
 0x47b   : > { %v809_v39 = vpop.f32.mrf.mxu0 }
 0x47c   : > { %v818_v41 = vand.u32 2147483647, %v816_v38  ;;  %v817_v34 = vadd.f32 %v815_v37, %v809_v39  ;;  %vm858_vm8 = vcmp.lt.f32.partialorder %v816_v38, 0.0 }
 0x47d   : > { %v811_v42 = vpop.f32.mrf.mxu0 }
 0x47e   : > { %v820_v43 = vmul.f32 0.70710677, %v818_v41  ;;  %v819_v44 = vand.u32 2147483647, %v817_v34  ;;  %vm859_vm6 = vcmp.lt.f32.partialorder %v817_v34, 0.0 }
 0x47f   : > { %v812_v45 = vpop.f32.mrf.mxu0 }
 0x480   : > { %v822_v46 = vmul.f32 0.3275911, %v820_v43  ;;  %v821_v47 = vmul.f32 0.70710677, %v819_v44  ;;  %v846_v55 = vsub.f32 0.0, %v820_v43  ;;  %v865_v45 = vmul.f32 0.5, %v817_v34 }
 0x482   : > { %v824_v48 = vadd.f32 1.0, %v822_v46  ;;  %v823_v50 = vmul.f32 0.3275911, %v821_v47  ;;  %v847_v52 = vsub.f32 0.0, %v821_v47  ;;  %v848_v56 = vmul.f32 %v846_v55, %v820_v43  ;;  %v2219_v55 = vld [vmem:[%s2277_s14 + $0x8] sm:$0xff] }
 0x483   : > { %v864_v43 = vmul.f32 0.5, %v816_v38  ;;  %v189_v38 = vld [vmem:[%s2888_s1 + $0x18] sm:$0xf] }
 0x484   : > { %2187 = vrcp.f32 %v824_v48  ;;  %v825_v51 = vadd.f32 1.0, %v823_v50  ;;  %v849_v53 = vmul.f32 %v847_v52, %v821_v47  ;;  %v850_v60 = vmul.f32 1.442695, %v848_v56  ;;  %v2220_v56 = vld [vmem:[%s2277_s14] sm:$0xff] }
 0x485   : > { %v871_v52 = vpack.c.bf16 %v2446_v31, %v2219_v55  ;;  %v2623_v31 = vld [vmem:[#allocation2 + $0x18] sm:$0xff] }
 0x486   : > { %2189 = vrcp.f32 %v825_v51  ;;  %v852_v8 = vmul.f32 1.442695, %v849_v53 }
 0x487   : > { %2191 = vpow2.f32 %v850_v60 }
 0x488   : > { %2193 = vpow2.f32 %v852_v8 }
 0x491   : > { %v2188_v57 = vpop.eup %2187 }
 0x492   : > { %v828_v59 = vmul.f32 1.0614054, %v2188_v57 }
 0x493   : > { %v2190_v1 = vpop.eup %2189 }
 0x494   : > { %v830_v3 = vadd.f32 -1.4531521, %v828_v59  ;;  %v829_v4 = vmul.f32 1.0614054, %v2190_v1  ;;  %v2192_v22 = vpop.eup %2191 }
 0x495   : > { %v2194_v27 = vpop.eup %2193 }
 0x496   : > { %v832_v58 = vmul.f32 %v2188_v57, %v830_v3  ;;  %v831_v2 = vadd.f32 -1.4531521, %v829_v4  ;;  %v2644_v3 = vld [vmem:[#allocation2] sm:$0xff]  ;;  %v952_v4 = vpop.permute.xlu0 %951 }
 0x498   : > { %v834_v9 = vadd.f32 1.4214138, %v832_v58  ;;  %v833_v10 = vmul.f32 %v2190_v1, %v831_v2 }
 0x49a   : > { %v836_v11 = vmul.f32 %v2188_v57, %v834_v9  ;;  %v835_v12 = vadd.f32 1.4214138, %v833_v10 }
 0x49c   : > { %v838_v13 = vadd.f32 -0.28449672, %v836_v11  ;;  %v837_v15 = vmul.f32 %v2190_v1, %v835_v12 }
 0x49e   : > { %v840_v16 = vmul.f32 %v2188_v57, %v838_v13  ;;  %v839_v62 = vadd.f32 -0.28449672, %v837_v15 }
 0x4a0   : > { %v842_v18 = vadd.f32 0.2548296, %v840_v16  ;;  %v841_v19 = vmul.f32 %v2190_v1, %v839_v62 }
 0x4a2   : > { %v844_v20 = vmul.f32 %v2188_v57, %v842_v18  ;;  %v843_v24 = vadd.f32 0.2548296, %v841_v19  ;;  %v870_v57 = vpack.c.bf16 %v2440_v23, %v2220_v56 }
 0x4a4   : > { %v854_v26 = vmul.f32 %v2192_v22, %v844_v20  ;;  %v845_v0 = vmul.f32 %v2190_v1, %v843_v24 }
 0x4a6   : > { %v856_v29 = vsub.f32 1.0, %v854_v26  ;;  %v855_v33 = vmul.f32 %v2194_v27, %v845_v0 }
 0x4a8   : > { %v860_v36 = vsub.f32 0.0, %v856_v29  ;;  %v857_v37 = vsub.f32 1.0, %v855_v33 }
 0x4aa   : > { %v862_v39 = vsel %vm858_vm8, %v860_v36, %v856_v29  ;;  %v861_v42 = vsub.f32 0.0, %v857_v37  ;;  %vm2953_vm8 = vmmov %vm2952_vm1 }
 0x4ab   : > { %v866_v41 = vadd.f32 1.0, %v862_v39 }
 0x4ac   : > { %v863_v44 = vsel %vm859_vm6, %v861_v42, %v857_v37  ;;  %vm2954_vm6 = vcmask 924672  }
 0x4ad   : > { %v867_v46 = vadd.f32 1.0, %v863_v44  ;;  %v868_v47 = vmul.f32 %v866_v41, %v864_v43 }
 0x4af   : > { %v869_v48 = vmul.f32 %v867_v46, %v865_v45  ;;  %v872_v51 = vpack.c.bf16 %v868_v47, %v2526_v63 }
 0x4b1   : > { %v873_v50 = vpack.c.bf16 %v869_v48, %v2532_v7 }
 0x4b3   : > { %894 = vmatprep.subr.bf16.mxu1 %v873_v50 }
 0x4b4   : > { %895 = vmatpush1.bf16.msra.mxu1 %v872_v51 }
 0x4b5   : > { %896 = vmatprep.subr.bf16.mxu1 %v871_v52 }
 0x4b8   : > { %897 = vmatpush1.bf16.msra.mxu1 %v870_v57 }
 0x4bb   : > { %1803 = vmatmul.mubr.msk.bf16.vlgmr.msra.gmra.mxu1 %vm2899_vm10, %v189_v38  ;;  %vm2957_vm10 = vcmask 916480  }
 0x4bc   : > { %1089 = vmatprep.mubr.bf16.mxu1 %v2237_v6  ;;  %vm2958_vm0 = vmmov %vm2957_vm10 }
 0x57b   : > { %v916_v63 = vpop.f32.mrf.mxu1 }
 0x57c   : > { %v2621_v7 = vadd.f32 %v2220_v56, %v916_v63 }
 0x57d   : > { %v918_v34 = vpop.f32.mrf.mxu1 }
 0x57e   : > { %v2625_v53 = vadd.f32 %v2219_v55, %v918_v34  ;;  %989 = vrot.lane.b32.xlu0 %v2621_v7, %s2231_s15  ;;  %1001 = vrot.lane.b32.xlu1 %v2621_v7, %s2232_s16 }
 0x57f   : > { %v920_v23 = vpop.f32.mrf.mxu1 }
 0x580   : > { %v2045_v59 = vpack.i.bf16 %v2623_v31, %v2625_v53  ;;  %v2065_v1 = vpack.i.bf16 %v2625_v53, %v2621_v7 }
 0x581   : > { %v921_v60 = vpop.f32.mrf.mxu1 }
 0x582   : > { %2046 = vrot.lane.b32.xlu0 %v2045_v59, %s2232_s16  ;;  %1023 = vrot.lane.b32.xlu1 %v2621_v7, %s2233_s17 }
 0x586   : > { %2051 = vrot.lane.b32.xlu0 %v2045_v59, %s2231_s15  ;;  %977 = vrot.lane.b32.xlu1 %v2621_v7, %s2234_s18 }
 0x58a   : > { %2061 = vrot.lane.b32.xlu0 %v2045_v59, %s2234_s18  ;;  %2056 = vrot.lane.b32.xlu1 %v2045_v59, %s2233_s17 }
 0x58e   : > { %2066 = vrot.lane.b32.xlu0 %v2065_v1, %s2236_s20  ;;  %963 = vrot.lane.b32.xlu1 %v2644_v3, %s2235_s19 }
 0x592   : > { %2076 = vrot.lane.b32.xlu0 %v2065_v1, %s2239_s22  ;;  %2071 = vrot.lane.b32.xlu1 %v2065_v1, %s2235_s19 }
 0x596   : > { %939 = vrot.lane.b32.xlu0 %v2644_v3, %s2239_s22  ;;  %2081 = vrot.lane.b32.xlu1 %v2065_v1, %s2238_s21 }
 0x59a   : > { %1013 = vrot.lane.b32.xlu1 %v2644_v3, %s2238_s21  ;;  %1180 = vrot.lane.b32.xlu0 %v2644_v3, %s2236_s20 }
 0x59e   : > { %1234 = vrot.lane.b32.xlu1 %v2623_v31, %s2232_s16 }
 0x5f0   : > { %v990_v8 = vpop.permute.xlu0 %989  ;;  %v1002_v58 = vpop.permute.xlu1 %1001 }
 0x5f4   : > { %v2047_v2 = vpop.permute.xlu0 %2046  ;;  %v1024_v9 = vpop.permute.xlu1 %1023 }
 0x5f5   : > { %v2049_v10 = vunpack.i.h.bf16 %v2047_v2  ;;  %v2048_v11 = vunpack.i.l.bf16 %v2047_v2 }
 0x5f7   : > { %v1007_v12 = vsel %vm2952_vm1, %v1002_v58, %v2048_v11  ;;  %v1008_v13 = vsel %vm2953_vm8, %v2048_v11, %v2049_v10  ;;  %vm2955_vm1 = vmmov %vm2954_vm6  ;;  %vm2956_vm8 = vcmask 1039360  }
 0x5f8   : > { %v1814_v15 = vpack.c.bf16 %v2241_v25, %v1008_v13  ;;  %v1817_v16 = vpack.c.bf16 %v2241_v25, %v1007_v12  ;;  %v2052_v62 = vpop.permute.xlu0 %2051  ;;  %v978_v18 = vpop.permute.xlu1 %977 }
 0x5f9   : > { %v2053_v19 = vunpack.i.l.bf16 %v2052_v62  ;;  %v2054_v20 = vunpack.i.h.bf16 %v2052_v62 }
 0x5fa   : > { %1815 = vmatprep.subr.msk.bf16.mxu1 %vm2333_vm5, %v1814_v15  ;;  %vm2959_vm5 = vmmov %vm2956_vm8  ;;  %v2168_v15 = vld [vmem:[%s2888_s1 + $0x1c] sm:$0xff]  }
 0x5fb   : > { %1818 = vmatpush1.bf16.msk.msra.mxu1 %vm2346_vm9, %v1817_v16  ;;  %v995_v33 = vsel %vm2954_vm6, %v990_v8, %v2053_v19  ;;  %v996_v25 = vsel %vm2955_vm1, %v2053_v19, %v2054_v20  ;;  %vm2960_vm9 = vcmask 121856   ;;  %vm2963_vm6 = vcmask 130048  }
 0x5fc   : > { %v2062_v22 = vpop.permute.xlu0 %2061  ;;  %v2057_v24 = vpop.permute.xlu1 %2056 }
 0x5fd   : > { %v2064_v26 = vunpack.i.h.bf16 %v2062_v22  ;;  %v2063_v0 = vunpack.i.l.bf16 %v2062_v22  ;;  %v2059_v27 = vunpack.i.h.bf16 %v2057_v24  ;;  %v2058_v29 = vunpack.i.l.bf16 %v2057_v24 }
 0x5ff   : > { %v984_v36 = vsel %vm2956_vm8, %v2063_v0, %v2064_v26  ;;  %v1029_v37 = vsel %vm2957_vm10, %v1024_v9, %v2058_v29  ;;  %v1030_v21 = vsel %vm2958_vm0, %v2058_v29, %v2059_v27  ;;  %v983_v43 = vsel %vm2959_vm5, %v978_v18, %v2063_v0  ;;  %vm2961_vm0 = vmmov %vm2960_vm9 }
 0x600   : > { %v1820_v39 = vpack.c.bf16 %v1030_v21, %v996_v25  ;;  %v1823_v41 = vpack.c.bf16 %v1029_v37, %v995_v33  ;;  %v2067_v30 = vpop.permute.xlu0 %2066  ;;  %v964_v42 = vpop.permute.xlu1 %963  ;;  %v1826_v44 = vpack.c.bf16 %v984_v36, %v2625_v53  ;;  %v1829_v50 = vpack.c.bf16 %v983_v43, %v2621_v7  ;;  %vm2965_vm8 = vmmov %vm2963_vm6 }
 0x601   : > { %v2069_v45 = vunpack.i.h.bf16 %v2067_v30  ;;  %v2068_v46 = vunpack.i.l.bf16 %v2067_v30  ;;  %vm2962_vm10 = vcmask 138240   ;;  %vm2966_vm5 = vcmask 654336  }
 0x602   : > { %1821 = vmatprep.subr.msk.bf16.mxu1 %vm2362_vm11, %v1820_v39  ;;  %vm2964_vm1 = vmmov %vm2962_vm10 }
 0x603   : > { %1824 = vmatpush1.bf16.msk.msra.mxu1 %vm2372_vm12, %v1823_v41  ;;  %v957_v52 = vsel %vm2960_vm9, %v952_v4, %v2068_v46  ;;  %v958_v56 = vsel %vm2961_vm0, %v2068_v46, %v2069_v45 }
 0x604   : > { %v2077_v47 = vpop.permute.xlu0 %2076  ;;  %v2072_v48 = vpop.permute.xlu1 %2071  ;;  %1827 = vmatprep.subr.msk.bf16.mxu1 %vm2386_vm14, %v1826_v44 }
 0x605   : > { %v2074_v51 = vunpack.i.h.bf16 %v2072_v48  ;;  %v2073_v55 = vunpack.i.l.bf16 %v2072_v48  ;;  %v2079_v57 = vunpack.i.h.bf16 %v2077_v47  ;;  %v2078_v38 = vunpack.i.l.bf16 %v2077_v47 }
 0x607   : > { %v969_v63 = vsel %vm229_vm15, %v964_v42, %v2073_v55  ;;  %v970_v34 = vsel %vm229_vm15, %v2073_v55, %v2074_v51  ;;  %1830 = vmatpush1.bf16.msk.msra.mxu1 %vm2395_vm7, %v1829_v50  ;;  %v946_v4 = vsel %vm2962_vm10, %v2078_v38, %v2079_v57  ;;  %vm2967_vm10 = vmmov %vm2966_vm5 }
 0x608   : > { %v1832_v23 = vpack.c.bf16 %v970_v34, %v958_v56  ;;  %v1835_v59 = vpack.c.bf16 %v969_v63, %v957_v52  ;;  %v2082_v60 = vpop.permute.xlu1 %2081  ;;  %v940_v58 = vpop.permute.xlu0 %939 }
 0x609   : > { %v2084_v1 = vunpack.i.h.bf16 %v2082_v60  ;;  %v2083_v8 = vunpack.i.l.bf16 %v2082_v60  ;;  %v945_v11 = vsel %vm2964_vm1, %v940_v58, %v2078_v38 }
 0x60a   : > { %1833 = vmatprep.subr.msk.bf16.mxu1 %vm2409_vm4, %v1832_v23 }
 0x60b   : > { %v1020_v2 = vsel %vm2963_vm6, %v2083_v8, %v2084_v1  ;;  %1836 = vmatpush1.bf16.msk.msra.mxu1 %vm2419_vm13, %v1835_v59  ;;  %vm2968_vm6 = vcmask 908288  }
 0x60c   : > { %v1838_v9 = vpack.c.bf16 %v1020_v2, %v946_v4  ;;  %v1014_v10 = vpop.permute.xlu1 %1013  ;;  %vm2969_vm1 = vmmov %vm2968_vm6 }
 0x60d   : > { %v1019_v12 = vsel %vm2965_vm8, %v1014_v10, %v2083_v8  ;;  %vm2970_vm8 = vcmask 916480  }
 0x60e   : > { %v1841_v13 = vpack.c.bf16 %v1019_v12, %v945_v11  ;;  %1839 = vmatprep.subr.msk.bf16.mxu1 %vm2362_vm11, %v1838_v9 }
 0x610   : > { %1842 = vmatpush1.bf16.msk.msra.mxu1 %vm2372_vm12, %v1841_v13 }
 0x613   : > { %1843 = vmatmul.mubr.msk.bf16.vlgmr.msra.gmra.mxu1 %vm2966_vm5, %v2168_v15  ;;  %vm2971_vm5 = vmmov %vm2970_vm8 }
 0x614   : > { %1099 = vmatprep.mubr.bf16.mxu1 %v2237_v6 }
 0x6d3   : > { %v1091_v16 = vpop.f32.mrf.mxu1 }
 0x6d4   : > { %v1108_v62 = vand.u32 2147483647, %v1091_v16  ;;  %vm1148_vm9 = vcmp.lt.f32.partialorder %v1091_v16, 0.0  ;;  %v1154_v10 = vmul.f32 0.5, %v1091_v16 }
 0x6d5   : > { %v1093_v18 = vpop.f32.mrf.mxu1 }
 0x6d6   : > { %v1110_v19 = vmul.f32 0.70710677, %v1108_v62  ;;  %v1109_v20 = vand.u32 2147483647, %v1093_v18  ;;  %vm1149_vm0 = vcmp.lt.f32.partialorder %v1093_v18, 0.0  ;;  %v1155_v62 = vmul.f32 0.5, %v1093_v18 }
 0x6d7   : > { %v2170_v18 = vld [vmem:[%s2888_s1 + $0x24] ss:$0 sps:$4 sm:$0xff]  }
 0x6d8   : > { %v1112_v22 = vmul.f32 0.3275911, %v1110_v19  ;;  %v1111_v24 = vmul.f32 0.70710677, %v1109_v20  ;;  %v1136_v29 = vsub.f32 0.0, %v1110_v19  ;;  %1844 = vmatmul.mubr.msk.bf16.gmra.mxu1 %vm2967_vm10, %v2170_v18  ;;  %vm2974_vm10 = vcmask 1043456  }
 0x6d9   : > { %1536 = vmatprep.mubr.bf16.mxu1 %v2237_v6 }
 0x6da   : > { %v1114_v26 = vadd.f32 1.0, %v1112_v22  ;;  %v1113_v0 = vmul.f32 0.3275911, %v1111_v24  ;;  %v1137_v33 = vsub.f32 0.0, %v1111_v24  ;;  %v1138_v25 = vmul.f32 %v1136_v29, %v1110_v19 }
 0x6dc   : > { %2195 = vrcp.f32 %v1114_v26  ;;  %v1115_v27 = vadd.f32 1.0, %v1113_v0  ;;  %v1139_v37 = vmul.f32 %v1137_v33, %v1111_v24  ;;  %v1140_v39 = vmul.f32 1.442695, %v1138_v25  ;;  %v1181_v24 = vpop.permute.xlu0 %1180  ;;  %v1235_v26 = vpop.permute.xlu1 %1234 }
 0x6de   : > { %2197 = vrcp.f32 %v1115_v27  ;;  %v1142_v43 = vmul.f32 1.442695, %v1139_v37 }
 0x6df   : > { %2199 = vpow2.f32 %v1140_v39 }
 0x6e0   : > { %2201 = vpow2.f32 %v1142_v43 }
 0x6e9   : > { %v2196_v36 = vpop.eup %2195 }
 0x6ea   : > { %v1118_v21 = vmul.f32 1.0614054, %v2196_v36 }
 0x6eb   : > { %v2198_v41 = vpop.eup %2197 }
 0x6ec   : > { %v1120_v30 = vadd.f32 -1.4531521, %v1118_v21  ;;  %v1119_v42 = vmul.f32 1.0614054, %v2198_v41  ;;  %v2200_v34 = vpop.eup %2199 }
 0x6ed   : > { %v2202_v1 = vpop.eup %2201 }
 0x6ee   : > { %v1122_v44 = vmul.f32 %v2196_v36, %v1120_v30  ;;  %v1121_v45 = vadd.f32 -1.4531521, %v1119_v42 }
 0x6f0   : > { %v1124_v46 = vadd.f32 1.4214138, %v1122_v44  ;;  %v1123_v47 = vmul.f32 %v2198_v41, %v1121_v45 }
 0x6f2   : > { %v1126_v48 = vmul.f32 %v2196_v36, %v1124_v46  ;;  %v1125_v50 = vadd.f32 1.4214138, %v1123_v47 }
 0x6f4   : > { %v1128_v51 = vadd.f32 -0.28449672, %v1126_v48  ;;  %v1127_v55 = vmul.f32 %v2198_v41, %v1125_v50 }
 0x6f6   : > { %v1130_v52 = vmul.f32 %v2196_v36, %v1128_v51  ;;  %v1129_v56 = vadd.f32 -0.28449672, %v1127_v55 }
 0x6f8   : > { %v1132_v57 = vadd.f32 0.2548296, %v1130_v52  ;;  %v1131_v38 = vmul.f32 %v2198_v41, %v1129_v56 }
 0x6fa   : > { %v1134_v63 = vmul.f32 %v2196_v36, %v1132_v57  ;;  %v1133_v23 = vadd.f32 0.2548296, %v1131_v38 }
 0x6fc   : > { %v1144_v59 = vmul.f32 %v2200_v34, %v1134_v63  ;;  %v1135_v60 = vmul.f32 %v2198_v41, %v1133_v23 }
 0x6fe   : > { %v1146_v8 = vsub.f32 1.0, %v1144_v59  ;;  %v1145_v58 = vmul.f32 %v2202_v1, %v1135_v60 }
 0x700   : > { %v1150_v4 = vsub.f32 0.0, %v1146_v8  ;;  %v1147_v2 = vsub.f32 1.0, %v1145_v58 }
 0x702   : > { %v1152_v9 = vsel %vm1148_vm9, %v1150_v4, %v1146_v8  ;;  %v1151_v12 = vsub.f32 0.0, %v1147_v2  ;;  %vm2972_vm9 = vcmask 924672  }
 0x703   : > { %v1156_v11 = vadd.f32 1.0, %v1152_v9 }
 0x704   : > { %v1153_v15 = vsel %vm1149_vm0, %v1151_v12, %v1147_v2  ;;  %vm2973_vm0 = vmmov %vm2972_vm9 }
 0x705   : > { %v2704_v13 = vmul.f32 %v1156_v11, %v1154_v10  ;;  %v1157_v19 = vadd.f32 1.0, %v1153_v15 }
 0x707   : > { %1252 = vrot.lane.b32.xlu1 %v2704_v13, %s2233_s17  ;;  %1218 = vrot.lane.b32.xlu0 %v2704_v13, %s2231_s15  ;;  %v2710_v20 = vmul.f32 %v1157_v19, %v1155_v62 }
 0x709   : > { %v2085_v22 = vpack.i.bf16 %v2710_v20, %v2704_v13  ;;  %v2095_v16 = vpack.i.bf16 %v2623_v31, %v2710_v20 }
 0x70b   : > { %1206 = vrot.lane.b32.xlu1 %v2704_v13, %s2234_s18  ;;  %2086 = vrot.lane.b32.xlu0 %v2085_v22, %s2232_s16 }
 0x70f   : > { %2096 = vrot.lane.b32.xlu1 %v2095_v16, %s2233_s17  ;;  %2091 = vrot.lane.b32.xlu0 %v2095_v16, %s2231_s15 }
 0x713   : > { %1192 = vrot.lane.b32.xlu1 %v2644_v3, %s2235_s19  ;;  %2101 = vrot.lane.b32.xlu0 %v2095_v16, %s2234_s18 }
 0x717   : > { %2111 = vrot.lane.b32.xlu1 %v2085_v22, %s2235_s19  ;;  %2106 = vrot.lane.b32.xlu0 %v2085_v22, %s2236_s20 }
 0x71b   : > { %2121 = vrot.lane.b32.xlu1 %v2085_v22, %s2238_s21  ;;  %2116 = vrot.lane.b32.xlu0 %v2085_v22, %s2239_s22 }
 0x71f   : > { %1242 = vrot.lane.b32.xlu1 %v2644_v3, %s2238_s21  ;;  %1168 = vrot.lane.b32.xlu0 %v2644_v3, %s2239_s22 }
 0x723   : > { %1457 = vrot.lane.b32.xlu1 %v2623_v31, %s2232_s16  ;;  %1403 = vrot.lane.b32.xlu0 %v2644_v3, %s2236_s20 }
 0x779   : > { %v1253_v0 = vpop.permute.xlu1 %1252  ;;  %v1219_v27 = vpop.permute.xlu0 %1218 }
 0x77d   : > { %v1207_v29 = vpop.permute.xlu1 %1206  ;;  %v2087_v33 = vpop.permute.xlu0 %2086 }
 0x77e   : > { %v2089_v25 = vunpack.i.h.bf16 %v2087_v33  ;;  %v2088_v36 = vunpack.i.l.bf16 %v2087_v33 }
 0x780   : > { %v1237_v37 = vsel %vm2968_vm6, %v2089_v25, %v1235_v26  ;;  %v1236_v21 = vsel %vm2969_vm1, %v2088_v36, %v2089_v25  ;;  %vm2975_vm6 = vmmov %vm2974_vm10  ;;  %vm2976_vm1 = vcmask 1039360  }
 0x781   : > { %v2097_v39 = vpop.permute.xlu1 %2096  ;;  %v1241_v41 = vsel %vm2321_vm2, %v1237_v37, 0.0  ;;  %v2092_v43 = vpop.permute.xlu0 %2091  ;;  %v1240_v44 = vsel %vm2325_vm3, %v1236_v21, 0.0 }
 0x782   : > { %v2099_v30 = vunpack.i.h.bf16 %v2097_v39  ;;  %v2098_v42 = vunpack.i.l.bf16 %v2097_v39  ;;  %v2094_v45 = vunpack.i.h.bf16 %v2092_v43  ;;  %v2093_v46 = vunpack.i.l.bf16 %v2092_v43  ;;  %v2169_v43 = vld [vmem:[%s2888_s1 + $0x28] sm:$0xff]  }
 0x783   : > { %v1271_v47 = vpack.c.bf16 %v1241_v41, %v1241_v41  ;;  %v1270_v48 = vpack.c.bf16 %v1240_v44, %v1240_v44  ;;  %v1095_v44 = vpop.f32.mrf.mxu1 }
 0x784   : > { %v1259_v50 = vsel %vm2970_vm8, %v2098_v42, %v2099_v30  ;;  %v1258_v51 = vsel %vm2971_vm5, %v1253_v0, %v2098_v42  ;;  %v1224_v55 = vsel %vm2972_vm9, %v1219_v27, %v2093_v46  ;;  %v1225_v52 = vsel %vm2973_vm0, %v2093_v46, %v2094_v45  ;;  %vm2977_vm8 = vmmov %vm2976_vm1 }
 0x785   : > { %1846 = vmatprep.subr.msk.bf16.mxu0 %vm2974_vm10, %v1271_v47  ;;  %v1193_v56 = vpop.permute.xlu1 %1192  ;;  %v1281_v57 = vsel %vm2975_vm6, %v1270_v48, 0  ;;  %v1848_v38 = vpack.c.bf16 %v1259_v50, %v1225_v52  ;;  %v2102_v63 = vpop.permute.xlu0 %2101  ;;  %v1851_v59 = vpack.c.bf16 %v1258_v51, %v1224_v55  ;;  %vm2978_vm5 = vcmask 121856  }
 0x786   : > { %1293 = vmatpush1.bf16.msra.mxu0 %v1281_v57  ;;  %v2104_v34 = vunpack.i.h.bf16 %v2102_v63  ;;  %v2103_v23 = vunpack.i.l.bf16 %v2102_v63  ;;  %vm2979_vm9 = vmmov %vm2978_vm5  ;;  %vm2980_vm0 = vcmask 130048   ;;  %vm2981_vm10 = vcmask 138240   ;;  %v1097_v45 = vpop.f32.mrf.mxu1 }
 0x787   : > { %1849 = vmatprep.subr.msk.bf16.mxu0 %vm2362_vm11, %v1848_v38  ;;  %vm2982_vm6 = vmmov %vm2980_vm0 }
 0x788   : > { %v1212_v60 = vsel %vm2976_vm1, %v1207_v29, %v2103_v23  ;;  %v1213_v1 = vsel %vm2977_vm8, %v2103_v23, %v2104_v34  ;;  %vm2983_vm1 = vmmov %vm2981_vm10  ;;  %vm2984_vm8 = vcmask 1043456  }
 0x789   : > { %v2112_v8 = vpop.permute.xlu1 %2111  ;;  %v1854_v58 = vpack.c.bf16 %v1213_v1, %v2710_v20  ;;  %v2107_v9 = vpop.permute.xlu0 %2106  ;;  %v1857_v12 = vpack.c.bf16 %v1212_v60, %v2704_v13 }
 0x78a   : > { %v2114_v4 = vunpack.i.h.bf16 %v2112_v8  ;;  %v2113_v2 = vunpack.i.l.bf16 %v2112_v8  ;;  %1852 = vmatpush1.bf16.msk.msra.mxu0 %vm2372_vm12, %v1851_v59  ;;  %v2109_v10 = vunpack.i.h.bf16 %v2107_v9  ;;  %v2108_v11 = vunpack.i.l.bf16 %v2107_v9 }
 0x78b   : > { %1855 = vmatprep.subr.msk.bf16.mxu0 %vm2386_vm14, %v1854_v58 }
 0x78c   : > { %v1199_v15 = vsel %vm229_vm15, %v2113_v2, %v2114_v4  ;;  %v1198_v62 = vsel %vm229_vm15, %v1193_v56, %v2113_v2  ;;  %v1186_v19 = vsel %vm2978_vm5, %v1181_v24, %v2108_v11  ;;  %v1187_v22 = vsel %vm2979_vm9, %v2108_v11, %v2109_v10 }
 0x78d   : > { %v2122_v16 = vpop.permute.xlu1 %2121  ;;  %v1860_v18 = vpack.c.bf16 %v1199_v15, %v1187_v22  ;;  %v2117_v27 = vpop.permute.xlu0 %2116  ;;  %v1863_v25 = vpack.c.bf16 %v1198_v62, %v1186_v19  ;;  %vm2985_vm5 = vcmask 588800  }
 0x78e   : > { %v2124_v26 = vunpack.i.h.bf16 %v2122_v16  ;;  %v2123_v0 = vunpack.i.l.bf16 %v2122_v16  ;;  %1858 = vmatpush1.bf16.msk.msra.mxu0 %vm2395_vm7, %v1857_v12  ;;  %v2119_v29 = vunpack.i.h.bf16 %v2117_v27  ;;  %v2118_v33 = vunpack.i.l.bf16 %v2117_v27 }
 0x78f   : > { %1861 = vmatprep.subr.msk.bf16.mxu0 %vm2409_vm4, %v1860_v18 }
 0x790   : > { %v1249_v36 = vsel %vm2980_vm0, %v2123_v0, %v2124_v26  ;;  %v1175_v24 = vsel %vm2981_vm10, %v2118_v33, %v2119_v29  ;;  %vm2986_vm10 = vcmask 908288  }
 0x791   : > { %v1243_v37 = vpop.permute.xlu1 %1242  ;;  %v1866_v21 = vpack.c.bf16 %v1249_v36, %v1175_v24  ;;  %v1169_v41 = vpop.permute.xlu0 %1168 }
 0x792   : > { %v1248_v39 = vsel %vm2982_vm6, %v1243_v37, %v2123_v0  ;;  %1864 = vmatpush1.bf16.msk.msra.mxu0 %vm2419_vm13, %v1863_v25  ;;  %v1174_v30 = vsel %vm2983_vm1, %v1169_v41, %v2118_v33  ;;  %vm2987_vm6 = vmmov %vm2986_vm10  ;;  %vm2988_vm1 = vcmask 916480  }
 0x793   : > { %v1869_v42 = vpack.c.bf16 %v1248_v39, %v1174_v30  ;;  %1867 = vmatprep.subr.msk.bf16.mxu0 %vm2362_vm11, %v1866_v21 }
 0x796   : > { %1870 = vmatpush1.bf16.msk.msra.mxu0 %vm2372_vm12, %v1869_v42 }
 0x797   : > { %1898 = vmatprep.subr.msk.bf16.mxu0 %vm2984_vm8, %v2242_v32  ;;  %vm2989_vm8 = vmmov %vm2988_vm1 }
 0x798   : > { %v2789_v46 = vpop.f32.mrf.mxu1 }
 0x799   : > { %1871 = vmatmul.mubr.msk.bf16.vlgmr.msra.gmra.mxu0 %vm2985_vm5, %v2169_v43  ;;  %vm2990_vm5 = vcmask 924672  }
 0x79a   : > { %1619 = vmatpush1.bf16.msra.mxu0 %v2603_v28  ;;  %1640 = vmatprep.mubr.bf16.mxu0 %v2237_v6  ;;  %v2791_v47 = vpop.f32.mrf.mxu1 }
 0x79c   : > { %v1105_v48 = vpop.f32.mrf.mxu1 }
 0x79e   : > { %v1106_v50 = vpop.f32.mrf.mxu1 }
 0x859   : > { %v1320_v51 = vpop.f32.mrf.mxu0 }
 0x85a   : > { %v1329_v55 = vadd.f32 %v1320_v51, %v1095_v44 }
 0x85b   : > { %v1322_v52 = vpop.f32.mrf.mxu0 }
 0x85c   : > { %v1331_v56 = vand.u32 2147483647, %v1329_v55  ;;  %v1330_v57 = vadd.f32 %v1322_v52, %v1097_v45  ;;  %vm1371_vm9 = vcmp.lt.f32.partialorder %v1329_v55, 0.0  ;;  %v1377_v48 = vmul.f32 0.5, %v1329_v55 }
 0x85e   : > { %v1333_v32 = vmul.f32 0.70710677, %v1331_v56  ;;  %v1332_v38 = vand.u32 2147483647, %v1330_v57  ;;  %vm1372_vm0 = vcmp.lt.f32.partialorder %v1330_v57, 0.0 }
 0x860   : > { %v1335_v63 = vmul.f32 0.3275911, %v1333_v32  ;;  %v1334_v34 = vmul.f32 0.70710677, %v1332_v38  ;;  %v1359_v59 = vsub.f32 0.0, %v1333_v32 }
 0x862   : > { %v1337_v28 = vadd.f32 1.0, %v1335_v63  ;;  %v1336_v23 = vmul.f32 0.3275911, %v1334_v34  ;;  %v1360_v60 = vsub.f32 0.0, %v1334_v34  ;;  %v1361_v1 = vmul.f32 %v1359_v59, %v1333_v32 }
 0x863   : > { %v1378_v32 = vmul.f32 0.5, %v1330_v57  ;;  %v1404_v57 = vpop.permute.xlu0 %1403 }
 0x864   : > { %2203 = vrcp.f32 %v1337_v28  ;;  %v1338_v6 = vadd.f32 1.0, %v1336_v23  ;;  %v1362_v58 = vmul.f32 %v1360_v60, %v1334_v34  ;;  %v1363_v2 = vmul.f32 1.442695, %v1361_v1 }
 0x866   : > { %2205 = vrcp.f32 %v1338_v6  ;;  %v1365_v12 = vmul.f32 1.442695, %v1362_v58 }
 0x867   : > { %2207 = vpow2.f32 %v1363_v2 }
 0x868   : > { %2209 = vpow2.f32 %v1365_v12 }
 0x871   : > { %v2204_v8 = vpop.eup %2203 }
 0x872   : > { %v1341_v4 = vmul.f32 1.0614054, %v2204_v8 }
 0x873   : > { %v2206_v9 = vpop.eup %2205 }
 0x874   : > { %v1343_v10 = vadd.f32 -1.4531521, %v1341_v4  ;;  %v1342_v11 = vmul.f32 1.0614054, %v2206_v9  ;;  %v2208_v24 = vpop.eup %2207 }
 0x875   : > { %v2210_v41 = vpop.eup %2209 }
 0x876   : > { %v1345_v15 = vmul.f32 %v2204_v8, %v1343_v10  ;;  %v1344_v62 = vadd.f32 -1.4531521, %v1342_v11 }
 0x878   : > { %v1347_v19 = vadd.f32 1.4214138, %v1345_v15  ;;  %v1346_v22 = vmul.f32 %v2206_v9, %v1344_v62 }
 0x87a   : > { %v1349_v16 = vmul.f32 %v2204_v8, %v1347_v19  ;;  %v1348_v18 = vadd.f32 1.4214138, %v1346_v22 }
 0x87c   : > { %v1351_v26 = vadd.f32 -0.28449672, %v1349_v16  ;;  %v1350_v0 = vmul.f32 %v2206_v9, %v1348_v18 }
 0x87e   : > { %v1353_v27 = vmul.f32 %v2204_v8, %v1351_v26  ;;  %v1352_v29 = vadd.f32 -0.28449672, %v1350_v0 }
 0x880   : > { %v1355_v33 = vadd.f32 0.2548296, %v1353_v27  ;;  %v1354_v25 = vmul.f32 %v2206_v9, %v1352_v29 }
 0x882   : > { %v1357_v36 = vmul.f32 %v2204_v8, %v1355_v33  ;;  %v1356_v37 = vadd.f32 0.2548296, %v1354_v25 }
 0x884   : > { %v1367_v21 = vmul.f32 %v2208_v24, %v1357_v36  ;;  %v1358_v39 = vmul.f32 %v2206_v9, %v1356_v37 }
 0x886   : > { %v1369_v30 = vsub.f32 1.0, %v1367_v21  ;;  %v1368_v42 = vmul.f32 %v2210_v41, %v1358_v39 }
 0x888   : > { %v1373_v43 = vsub.f32 0.0, %v1369_v30  ;;  %v1370_v44 = vsub.f32 1.0, %v1368_v42 }
 0x88a   : > { %v1375_v45 = vsel %vm1371_vm9, %v1373_v43, %v1369_v30  ;;  %v1374_v51 = vsub.f32 0.0, %v1370_v44  ;;  %vm2991_vm9 = vmmov %vm2990_vm5 }
 0x88b   : > { %v1379_v50 = vadd.f32 1.0, %v1375_v45 }
 0x88c   : > { %v1376_v56 = vsel %vm1372_vm0, %v1374_v51, %v1370_v44  ;;  %vm2992_vm0 = vcmask 1043456  }
 0x88d   : > { %v2793_v52 = vmul.f32 %v1379_v50, %v1377_v48  ;;  %v1380_v38 = vadd.f32 1.0, %v1376_v56 }
 0x88f   : > { %1475 = vrot.lane.b32.xlu1 %v2793_v52, %s2233_s17  ;;  %1441 = vrot.lane.b32.xlu0 %v2793_v52, %s2231_s15  ;;  %v2799_v63 = vmul.f32 %v1380_v38, %v1378_v32 }
 0x891   : > { %v2125_v34 = vpack.i.bf16 %v2799_v63, %v2793_v52  ;;  %v2135_v55 = vpack.i.bf16 %v2623_v31, %v2799_v63  ;;  %v1458_v31 = vpop.permute.xlu1 %1457 }
 0x893   : > { %1429 = vrot.lane.b32.xlu1 %v2793_v52, %s2234_s18  ;;  %2126 = vrot.lane.b32.xlu0 %v2125_v34, %s2232_s16 }
 0x897   : > { %2136 = vrot.lane.b32.xlu1 %v2135_v55, %s2233_s17  ;;  %2131 = vrot.lane.b32.xlu0 %v2135_v55, %s2231_s15 }
 0x89b   : > { %1415 = vrot.lane.b32.xlu1 %v2644_v3, %s2235_s19  ;;  %2141 = vrot.lane.b32.xlu0 %v2135_v55, %s2234_s18 }
 0x89f   : > { %2151 = vrot.lane.b32.xlu1 %v2125_v34, %s2235_s19  ;;  %2146 = vrot.lane.b32.xlu0 %v2125_v34, %s2236_s20  ;;  %s143_s20 = scalar_lea.vmem %s2889_s2, %s1902_s11 }
 0x8a3   : > { %2161 = vrot.lane.b32.xlu1 %v2125_v34, %s2238_s21  ;;  %2156 = vrot.lane.b32.xlu0 %v2125_v34, %s2239_s22 }
 0x8a7   : > { %1465 = vrot.lane.b32.xlu1 %v2644_v3, %s2238_s21  ;;  %1391 = vrot.lane.b32.xlu0 %v2644_v3, %s2239_s22 }
 0x901   : > { %v1476_v28 = vpop.permute.xlu1 %1475  ;;  %v1442_v23 = vpop.permute.xlu0 %1441 }
 0x905   : > { %v1430_v6 = vpop.permute.xlu1 %1429  ;;  %v2127_v59 = vpop.permute.xlu0 %2126 }
 0x906   : > { %v2129_v60 = vunpack.i.h.bf16 %v2127_v59  ;;  %v2128_v1 = vunpack.i.l.bf16 %v2127_v59 }
 0x908   : > { %v1460_v8 = vsel %vm2986_vm10, %v2129_v60, %v1458_v31  ;;  %v1459_v58 = vsel %vm2987_vm6, %v2128_v1, %v2129_v60  ;;  %vm2996_vm6 = vcmask 121856  }
 0x909   : > { %v2137_v4 = vpop.permute.xlu1 %2136  ;;  %v1464_v2 = vsel %vm2321_vm2, %v1460_v8, 0.0  ;;  %v2132_v11 = vpop.permute.xlu0 %2131  ;;  %v1463_v3 = vsel %vm2325_vm3, %v1459_v58, 0.0  ;;  %vm2993_vm2 = vmmov %vm2992_vm0  ;;  %vm2994_vm3 = vcmask 1039360  }
 0x90a   : > { %v2139_v9 = vunpack.i.h.bf16 %v2137_v4  ;;  %v2138_v10 = vunpack.i.l.bf16 %v2137_v4  ;;  %v2134_v12 = vunpack.i.h.bf16 %v2132_v11  ;;  %v2133_v15 = vunpack.i.l.bf16 %v2132_v11  ;;  %vm2995_vm10 = vmmov %vm2994_vm3  ;;  %v1324_v58 = vpop.f32.mrf.mxu0 }
 0x90b   : > { %v1494_v62 = vpack.c.bf16 %v1464_v2, %v1464_v2  ;;  %v1493_v19 = vpack.c.bf16 %v1463_v3, %v1463_v3  ;;  %v1545_v5 = vadd.f32 %v1324_v58, %v2789_v46 }
 0x90c   : > { %v1482_v22 = vsel %vm2988_vm1, %v2138_v10, %v2139_v9  ;;  %v1481_v16 = vsel %vm2989_vm8, %v1476_v28, %v2138_v10  ;;  %v1447_v18 = vsel %vm2990_vm5, %v1442_v23, %v2133_v15  ;;  %v1448_v26 = vsel %vm2991_vm9, %v2133_v15, %v2134_v12  ;;  %vm2997_vm1 = vmmov %vm2996_vm6  ;;  %v1326_v4 = vpop.f32.mrf.mxu0 }
 0x90d   : > { %1872 = vmatprep.subr.msk.bf16.mxu1 %vm2992_vm0, %v1494_v62  ;;  %v1416_v14 = vpop.permute.xlu1 %1415  ;;  %v1499_v0 = vsel %vm2993_vm2, %v1493_v19, 0  ;;  %v1874_v27 = vpack.c.bf16 %v1482_v22, %v1448_v26  ;;  %v2142_v17 = vpop.permute.xlu0 %2141  ;;  %v1877_v25 = vpack.c.bf16 %v1481_v16, %v1447_v18  ;;  %vm2998_vm8 = vcmask 130048  }
 0x90e   : > { %1511 = vmatpush1.bf16.msra.mxu1 %v1499_v0  ;;  %v2144_v29 = vunpack.i.h.bf16 %v2142_v17  ;;  %v2143_v33 = vunpack.i.l.bf16 %v2142_v17  ;;  %v1546_v9 = vadd.f32 %v1326_v4, %v2791_v47 }
 0x90f   : > { %1875 = vmatprep.subr.msk.bf16.mxu1 %vm2362_vm11, %v1874_v27 }
 0x910   : > { %v1435_v36 = vsel %vm2994_vm3, %v1430_v6, %v2143_v33  ;;  %v1436_v24 = vsel %vm2995_vm10, %v2143_v33, %v2144_v29 }
 0x911   : > { %v2152_v37 = vpop.permute.xlu1 %2151  ;;  %v1880_v21 = vpack.c.bf16 %v1436_v24, %v2799_v63  ;;  %v2147_v30 = vpop.permute.xlu0 %2146  ;;  %v1883_v44 = vpack.c.bf16 %v1435_v36, %v2793_v52 }
 0x912   : > { %v2154_v39 = vunpack.i.h.bf16 %v2152_v37  ;;  %v2153_v41 = vunpack.i.l.bf16 %v2152_v37  ;;  %1878 = vmatpush1.bf16.msk.msra.mxu1 %vm2372_vm12, %v1877_v25  ;;  %v2149_v42 = vunpack.i.h.bf16 %v2147_v30  ;;  %v2148_v43 = vunpack.i.l.bf16 %v2147_v30 }
 0x913   : > { %1881 = vmatprep.subr.msk.bf16.mxu1 %vm2386_vm14, %v1880_v21  ;;  %vm2999_vm14 = vcmask 138240  }
 0x914   : > { %v1422_v45 = vsel %vm229_vm15, %v2153_v41, %v2154_v39  ;;  %v1421_v48 = vsel %vm229_vm15, %v1416_v14, %v2153_v41  ;;  %v1409_v50 = vsel %vm2996_vm6, %v1404_v57, %v2148_v43  ;;  %v1410_v51 = vsel %vm2997_vm1, %v2148_v43, %v2149_v42  ;;  %vm3000_vm15 = vmmov %vm2998_vm8 }
 0x915   : > { %v2162_v56 = vpop.permute.xlu1 %2161  ;;  %v1886_v32 = vpack.c.bf16 %v1422_v45, %v1410_v51  ;;  %v2157_v55 = vpop.permute.xlu0 %2156  ;;  %v1889_v23 = vpack.c.bf16 %v1421_v48, %v1409_v50  ;;  %vm3001_vm5 = vmmov %vm2999_vm14 }
 0x916   : > { %v2164_v38 = vunpack.i.h.bf16 %v2162_v56  ;;  %v2163_v34 = vunpack.i.l.bf16 %v2162_v56  ;;  %1884 = vmatpush1.bf16.msk.msra.mxu1 %vm2395_vm7, %v1883_v44  ;;  %v2159_v31 = vunpack.i.h.bf16 %v2157_v55  ;;  %v2158_v28 = vunpack.i.l.bf16 %v2157_v55 }
 0x917   : > { %1887 = vmatprep.subr.msk.bf16.mxu1 %vm2409_vm4, %v1886_v32  ;;  %vm3002_vm7 = vcmask 588800  }
 0x918   : > { %v1472_v49 = vsel %vm2998_vm8, %v2163_v34, %v2164_v38  ;;  %v1398_v57 = vsel %vm2999_vm14, %v2158_v28, %v2159_v31 }
 0x919   : > { %v1466_v6 = vpop.permute.xlu1 %1465  ;;  %v1892_v59 = vpack.c.bf16 %v1472_v49, %v1398_v57  ;;  %v1392_v1 = vpop.permute.xlu0 %1391 }
 0x91a   : > { %v1471_v60 = vsel %vm3000_vm15, %v1466_v6, %v2163_v34  ;;  %1890 = vmatpush1.bf16.msk.msra.mxu1 %vm2419_vm13, %v1889_v23  ;;  %v1397_v54 = vsel %vm3001_vm5, %v1392_v1, %v2158_v28  ;;  %vm3003_vm13 = vcmask 326656  }
 0x91b   : > { %v1895_v8 = vpack.c.bf16 %v1471_v60, %v1397_v54  ;;  %1893 = vmatprep.subr.msk.bf16.mxu1 %vm2362_vm11, %v1892_v59 }
 0x91e   : > { %1896 = vmatpush1.bf16.msk.msra.mxu1 %vm2372_vm12, %v1895_v8 }
 0x921   : > { %1897 = vmatmul.mubr.msk.bf16.vlgmr.msra.gmra.mxu1 %vm3002_vm7, %v1809_v61 }
 0x9e1   : > { %v1538_v2 = vpop.f32.mrf.mxu1 }
 0x9e2   : > { %v1547_v10 = vadd.f32 %v1545_v5, %v1538_v2 }
 0x9e3   : > { %v1540_v11 = vpop.f32.mrf.mxu1 }
 0x9e4   : > { %v1549_v35 = vand.u32 2147483647, %v1547_v10  ;;  %v1548_v3 = vadd.f32 %v1546_v9, %v1540_v11  ;;  %vm1589_vm11 = vcmp.lt.f32.partialorder %v1547_v10, 0.0  ;;  %v1595_v1 = vmul.f32 0.5, %v1547_v10  ;;  %v1810_v10 = vld [vmem:[%s2888_s1 + $0x34] sm:$0xf] }
 0x9e5   : > { %v1542_v12 = vpop.f32.mrf.mxu1  ;;  %v1602_v9 = vpack.c.bf16 %v2710_v20, %v2625_v53  ;;  %v1601_v11 = vpack.c.bf16 %v2704_v13, %v2621_v7 }
 0x9e6   : > { %v1551_v40 = vmul.f32 0.70710677, %v1549_v35  ;;  %v1550_v15 = vand.u32 2147483647, %v1548_v3  ;;  %vm1590_vm12 = vcmp.lt.f32.partialorder %v1548_v3, 0.0  ;;  %v1596_v8 = vmul.f32 0.5, %v1548_v3 }
 0x9e7   : > { %v1543_v62 = vpop.f32.mrf.mxu1 }
 0x9e8   : > { %v1553_v19 = vmul.f32 0.3275911, %v1551_v40  ;;  %v1552_v22 = vmul.f32 0.70710677, %v1550_v15  ;;  %v1577_v14 = vsub.f32 0.0, %v1551_v40 }
 0x9ea   : > { %v1555_v16 = vadd.f32 1.0, %v1553_v19  ;;  %v1554_v18 = vmul.f32 0.3275911, %v1552_v22  ;;  %v1578_v46 = vsub.f32 0.0, %v1552_v22  ;;  %v1579_v0 = vmul.f32 %v1577_v14, %v1551_v40 }
 0x9ec   : > { %2211 = vrcp.f32 %v1555_v16  ;;  %v1556_v26 = vadd.f32 1.0, %v1554_v18  ;;  %v1580_v47 = vmul.f32 %v1578_v46, %v1552_v22  ;;  %v1581_v29 = vmul.f32 1.442695, %v1579_v0 }
 0x9ee   : > { %2213 = vrcp.f32 %v1556_v26  ;;  %v1583_v24 = vmul.f32 1.442695, %v1580_v47 }
 0x9ef   : > { %2215 = vpow2.f32 %v1581_v29 }
 0x9f0   : > { %2217 = vpow2.f32 %v1583_v24 }
 0x9f9   : > { %v2212_v27 = vpop.eup %2211 }
 0x9fa   : > { %v1559_v17 = vmul.f32 1.0614054, %v2212_v27 }
 0x9fb   : > { %v2214_v33 = vpop.eup %2213 }
 0x9fc   : > { %v1561_v25 = vadd.f32 -1.4531521, %v1559_v17  ;;  %v1560_v36 = vmul.f32 1.0614054, %v2214_v33  ;;  %v2216_v32 = vpop.eup %2215 }
 0x9fd   : > { %v2218_v31 = vpop.eup %2217 }
 0x9fe   : > { %v1563_v37 = vmul.f32 %v2212_v27, %v1561_v25  ;;  %v1562_v21 = vadd.f32 -1.4531521, %v1560_v36 }
 0xa00   : > { %v1565_v39 = vadd.f32 1.4214138, %v1563_v37  ;;  %v1564_v41 = vmul.f32 %v2214_v33, %v1562_v21 }
 0xa02   : > { %v1567_v30 = vmul.f32 %v2212_v27, %v1565_v39  ;;  %v1566_v42 = vadd.f32 1.4214138, %v1564_v41 }
 0xa04   : > { %v1569_v43 = vadd.f32 -0.28449672, %v1567_v30  ;;  %v1568_v44 = vmul.f32 %v2214_v33, %v1566_v42 }
 0xa06   : > { %v1571_v45 = vmul.f32 %v2212_v27, %v1569_v43  ;;  %v1570_v48 = vadd.f32 -0.28449672, %v1568_v44 }
 0xa08   : > { %v1573_v50 = vadd.f32 0.2548296, %v1571_v45  ;;  %v1572_v51 = vmul.f32 %v2214_v33, %v1570_v48 }
 0xa0a   : > { %v1575_v56 = vmul.f32 %v2212_v27, %v1573_v50  ;;  %v1574_v38 = vadd.f32 0.2548296, %v1572_v51 }
 0xa0c   : > { %v1585_v34 = vmul.f32 %v2216_v32, %v1575_v56  ;;  %v1576_v55 = vmul.f32 %v2214_v33, %v1574_v38 }
 0xa0e   : > { %v1587_v28 = vsub.f32 1.0, %v1585_v34  ;;  %v1586_v23 = vmul.f32 %v2218_v31, %v1576_v55 }
 0xa10   : > { %v1591_v49 = vsub.f32 0.0, %v1587_v28  ;;  %v1588_v57 = vsub.f32 1.0, %v1586_v23 }
 0xa12   : > { %v1593_v6 = vsel %vm1589_vm11, %v1591_v49, %v1587_v28  ;;  %v1592_v60 = vsub.f32 0.0, %v1588_v57 }
 0xa13   : > { %v1597_v59 = vadd.f32 1.0, %v1593_v6 }
 0xa14   : > { %v1594_v54 = vsel %vm1590_vm12, %v1592_v60, %v1588_v57 }
 0xa15   : > { %v1598_v61 = vadd.f32 1.0, %v1594_v54  ;;  %v1599_v58 = vmul.f32 %v1597_v59, %v1595_v1 }
 0xa17   : > { %v1600_v4 = vmul.f32 %v1598_v61, %v1596_v8  ;;  %v1603_v2 = vpack.c.bf16 %v1599_v58, %v2793_v52 }
 0xa19   : > { %v1604_v5 = vpack.c.bf16 %v1600_v4, %v2799_v63 }
 0xa1b   : > { %1620 = vmatprep.subr.bf16.mxu0 %v1604_v5 }
 0xa1c   : > { %1621 = vmatpush1.bf16.msra.mxu0 %v1603_v2 }
 0xa1d   : > { %1622 = vmatprep.subr.bf16.mxu0 %v1602_v9 }
 0xa20   : > { %1623 = vmatpush1.bf16.msra.mxu0 %v1601_v11 }
 0xa23   : > { %1899 = vmatmul.mubr.msk.bf16.vlgmr.msra.gmra.mxu0 %vm3003_vm13, %v1810_v10 }
 0xae3   : > { %v1642_v52 = vpop.f32.mrf.mxu0 }
 0xae4   : > { %v1643_v20 = vadd.f32 %v1642_v52, %v2621_v7 }
 0xae5   : > { %v1644_v63 = vpop.f32.mrf.mxu0 }
 0xae6   : > { %1649 = vst [vmem:[%s143_s20] sm:$0xff] %v1643_v20  ;;  %v1645_v35 = vadd.f32 %v1644_v63, %v2625_v53 }
 0xae7   : > { %v1646_v13 = vpop.f32.mrf.mxu0 }
 0xae8   : > { %1650 = vst [vmem:[%s143_s20 + $0x8] sm:$0xff] %v1645_v35 }
 0xae9   : > { %v1647_v3 = vpop.f32.mrf.mxu0 }
 0xaea PF: > { %s12_s9 = sadd.s32 1, %s2228_s9  }
 0xaeb   : > { %p9_p4 = scmp.ge.s32.totalorder %s12_s9, 4  }
 0xaed   :  { %11 = sbr.rel (!%p9_p4) target bundleno = 1 (0x1), region = 59 }

</bundles_post_ra>
